<compile_context>
chip_gen: v7x
topology: tpu7x:2x2x1
jax: 0.10.0
libtpu: 0.0.40
codegen_flags: <defaults>
</compile_context>

<pallas_src>
import jax
import jax.numpy as jnp
import numpy as np
from jax.experimental import pallas as pl
from jax.experimental.pallas import tpu as pltpu


def _input_attention_encoder_kernel(
    x_ref,       # (TB, T, N)   float32 inputs
    We_wT_ref,   # (2M, T)      W_e.weight.T            (bf16)
    We_b_ref,    # (1, T)       W_e.bias                (f32)
    Ue_wT_ref,   # (T, T)       U_e.weight.T            (f32)
    ve_ref,      # (T, 1)       v_e.weight as a column  (f32)
    W_g_ref,     # (N+M, 4M)    [weight_ih.T ; weight_hh.T]  gate order i,f,g,o (bf16)
    b_g_ref,     # (1, 4M)      bias_ih + bias_hh       (f32)
    out_ref,     # (TB, T*M)    encoded hidden states (lane-dense writeback)
):
    Bb, T, N = x_ref.shape
    M = W_g_ref.shape[1] // 4

    x = x_ref[...]                                   # (Bb, T, N)  f32
    We_wT = We_wT_ref[...]                           # (2M, T)     bf16
    Ue_wT = Ue_wT_ref[...]                           # (T, T)      f32
    W_g = W_g_ref[...]                               # (N+M, 4M)   bf16

    # Hoisted broadcasts (JAX does not CSE broadcast_in_dim inside the unrolled loop).
    We_b = jnp.broadcast_to(We_b_ref[...], (Bb, T))
    b_g = jnp.broadcast_to(b_g_ref[...], (Bb, 4 * M))
    ve = jnp.broadcast_to(ve_ref[...][None, :, :], (Bb, T, N))

    # Loop-invariant attention term (fp32, once per call):
    #   y[b, s, n] = sum_t x[b, t, n] * Ue_w[s, t]
    # dot_general keeps N on the lane axis; one tiny minor transpose BEFORE the loop
    # buys an N-lane-major layout for every per-step tanh/exp.
    y = jax.lax.dot_general(x, Ue_wT, (((1,), (0,)), ((), ())),
                            preferred_element_type=jnp.float32)   # (Bb, N, T)
    y = jnp.swapaxes(y, 1, 2)                                     # (Bb, T, N)

    h = jnp.zeros((Bb, M), jnp.float32)
    s = jnp.zeros((Bb, M), jnp.float32)
    hs = []

    # Fully unrolled recurrence over the T timesteps (T is static and small).
    for t in range(T):
        # Attention scores: one fused MXU matmul over concat([h, s]) (bf16 ops, f32 acc).
        hc = jnp.concatenate([h, s], axis=1).astype(jnp.bfloat16)           # (Bb, 2M)
        xw = jnp.dot(hc, We_wT, preferred_element_type=jnp.float32) + We_b  # (Bb, T)

        z = jnp.tanh(xw[:, :, None] + y)                                    # (Bb, T, N)
        e = jnp.sum(z * ve, axis=1)                                         # (Bb, N)
        # tanh output is in [-1, 1] so |e| <= sum_s |v_e[s]| ~ sqrt(T); exp is safe
        # without the usual max-subtraction (softmax is shift-invariant).
        pe = jnp.exp(e)
        inv = pl.reciprocal(jnp.sum(pe, axis=1, keepdims=True), approx=True)
        alpha = pe * inv                                                    # softmax over N

        wx = alpha * x[:, t, :]                                             # (Bb, N), static t

        # LSTMCell: one fused MXU matmul over concat([wx, h]) (gate order i, f, g, o).
        gin = jnp.concatenate([wx, h], axis=1).astype(jnp.bfloat16)         # (Bb, N+M)
        gates = jnp.dot(gin, W_g, preferred_element_type=jnp.float32) + b_g  # (Bb, 4M)

        # Full-width nonlinearities (gates is exactly one 128-lane vreg), static slices.
        sig = jax.nn.sigmoid(gates)
        tg = jnp.tanh(gates)
        i_g = sig[:, 0 * M:1 * M]
        f_g = sig[:, 1 * M:2 * M]
        g_g = tg[:, 2 * M:3 * M]
        o_g = sig[:, 3 * M:4 * M]
        s = f_g * s + i_g * g_g
        h = o_g * jnp.tanh(s)
        hs.append(h)

    # Single lane-dense writeback: (Bb, T*M) = 256 lanes, unmasked vst.
    out_ref[...] = jnp.concatenate(hs, axis=1)


@jax.jit
def input_attention_encoder(inputs, params):
    B, T, N = inputs.shape
    M = params['Whh'].shape[1]

    # Weight prep hoisted out of the kernel (transposes, stacking, bias fusion, bf16).
    We_wT = params['We_w'].T.astype(jnp.bfloat16)                  # (2M, T)
    Ue_wT = params['Ue_w'].T                                       # (T, T)  fp32
    ve_col = params['ve_w'].reshape(T, 1)                          # (T, 1)
    W_g = jnp.concatenate([params['Wih'].T, params['Whh'].T],
                          axis=0).astype(jnp.bfloat16)             # (N+M, 4M)
    b_g = params['bih'] + params['bhh']                            # (1, 4M)

    # Batch tile: whole batch at these toy shapes.  At scale, tile B in multiples of 8
    # (>=128 rows v5e, >=256 v6e/v7x) so the parallel grid feeds both v7x TensorCores.
    TB = B
    grid_spec = pltpu.PrefetchScalarGridSpec(
        num_scalar_prefetch=0,
        grid=(pl.cdiv(B, TB),),
        in_specs=[
            pl.BlockSpec((TB, T, N), lambda i: (i, 0, 0)),         # inputs
            pl.BlockSpec((2 * M, T), lambda i: (0, 0)),            # We_wT
            pl.BlockSpec((1, T), lambda i: (0, 0)),                # We_b
            pl.BlockSpec((T, T), lambda i: (0, 0)),                # Ue_wT
            pl.BlockSpec((T, 1), lambda i: (0, 0)),                # ve
            pl.BlockSpec((N + M, 4 * M), lambda i: (0, 0)),        # W_g
            pl.BlockSpec((1, 4 * M), lambda i: (0, 0)),            # b_g
        ],
        out_specs=pl.BlockSpec((TB, T * M), lambda i: (i, 0)),
    )

    out_flat = pl.pallas_call(
        _input_attention_encoder_kernel,
        out_shape=jax.ShapeDtypeStruct((B, T * M), jnp.float32),
        grid_spec=grid_spec,
        compiler_params=pltpu.CompilerParams(
            dimension_semantics=("parallel",),
            vmem_limit_bytes=32 * 1024 * 1024),
    )(inputs, We_wT, params['We_b'], Ue_wT, ve_col, W_g, b_g)

    return out_flat.reshape(B, T, M)


def init_params(key, N, M, T):
    ks = jax.random.split(key, 8)
    u = lambda k, shape, bound: jax.random.uniform(
        k, shape, jnp.float32, minval=-bound, maxval=bound)
    lstm_b = 1.0 / np.sqrt(M)
    return {
        'We_w': u(ks[0], (T, 2 * M), 1.0 / np.sqrt(2 * M)),
        'We_b': u(ks[1], (1, T), 1.0 / np.sqrt(2 * M)),
        'Ue_w': u(ks[2], (T, T), 1.0 / np.sqrt(T)),
        've_w': u(ks[3], (1, T), 1.0 / np.sqrt(T)),
        'Wih': u(ks[4], (4 * M, N), lstm_b),
        'bih': u(ks[5], (1, 4 * M), lstm_b),
        'Whh': u(ks[6], (4 * M, M), lstm_b),
        'bhh': u(ks[7], (1, 4 * M), lstm_b),
    }


def reference(inputs, p):
    """Pure-JAX re-implementation of the PyTorch forward (verification)."""
    B, T, N = inputs.shape
    M = p['Whh'].shape[1]
    h = jnp.zeros((B, M), jnp.float32)
    s = jnp.zeros((B, M), jnp.float32)
    outs = []
    for t in range(T):
        hc = jnp.concatenate([h, s], axis=1)
        xw = hc @ p['We_w'].T + p['We_b'][0]
        y = jnp.einsum('btn,st->bns', inputs, p['Ue_w'])
        z = jnp.tanh(xw[:, None, :] + y)
        e = jnp.einsum('bns,s->bn', z, p['ve_w'][0])
        alpha = jax.nn.softmax(e, axis=1)
        wx = alpha * inputs[:, t, :]
        gates = wx @ p['Wih'].T + p['bih'][0] + h @ p['Whh'].T + p['bhh'][0]
        i = jax.nn.sigmoid(gates[:, :M])
        f = jax.nn.sigmoid(gates[:, M:2 * M])
        g = jnp.tanh(gates[:, 2 * M:3 * M])
        o = jax.nn.sigmoid(gates[:, 3 * M:])
        s = f * s + i * g
        h = o * jnp.tanh(s)
        outs.append(h)
    return jnp.stack(outs, axis=1)


if __name__ == "__main__":
    B, T, N, M = 2, 8, 16, 32   # batch, timesteps, num series, LSTM units

    key = jax.random.PRNGKey(0)
    k_x, k_p = jax.random.split(key)
    inputs = jax.random.normal(k_x, (B, T, N), jnp.float32)
    params = init_params(k_p, N, M, T)

    out = jax.block_until_ready(input_attention_encoder(inputs, params))
    ref = jax.block_until_ready(reference(inputs, params))

    assert out.shape == (B, T, M), out.shape
    # Tolerance covers bf16 MXU operands on the recurrent matmuls + approx reciprocal
    # in the softmax denominator (fp32 accumulation / elementwise everywhere else).
    np.testing.assert_allclose(np.asarray(out), np.asarray(ref),
                               atol=3e-2, rtol=3e-2)
    print("KERNEL_OK")
</pallas_src>

<mosaic_0001>
module attributes {stable_mosaic.version = 11 : i64} {
  func.func @_input_attention_encoder_kernel(%arg0: i32, %arg1: memref<2x8x16xf32, #tpu.memory_space<vmem>>, %arg2: memref<64x8xbf16, #tpu.memory_space<vmem>>, %arg3: memref<1x8xf32, #tpu.memory_space<vmem>>, %arg4: memref<8x8xf32, #tpu.memory_space<vmem>>, %arg5: memref<8x1xf32, #tpu.memory_space<vmem>>, %arg6: memref<48x128xbf16, #tpu.memory_space<vmem>>, %arg7: memref<1x128xf32, #tpu.memory_space<vmem>>, %arg8: memref<2x256xf32, #tpu.memory_space<vmem>>) attributes {dimension_semantics = [#tpu.dimension_semantics<parallel>], iteration_bounds = array<i64: 1>, scalar_prefetch = 0 : i64, scratch_operands = 0 : i64, tpu.core_type = #tpu.core_type<tc>, window_params = [{transform_indices = @transform_0, window_bounds = array<i64: 2, 8, 16>}, {pipeline_mode = #tpu.pipeline_mode<synchronous>, transform_indices = @transform_1, window_bounds = array<i64: 64, 8>}, {pipeline_mode = #tpu.pipeline_mode<synchronous>, transform_indices = @transform_2, window_bounds = array<i64: 1, 8>}, {pipeline_mode = #tpu.pipeline_mode<synchronous>, transform_indices = @transform_3, window_bounds = array<i64: 8, 8>}, {pipeline_mode = #tpu.pipeline_mode<synchronous>, transform_indices = @transform_4, window_bounds = array<i64: 8, 1>}, {pipeline_mode = #tpu.pipeline_mode<synchronous>, transform_indices = @transform_5, window_bounds = array<i64: 48, 128>}, {pipeline_mode = #tpu.pipeline_mode<synchronous>, transform_indices = @transform_6, window_bounds = array<i64: 1, 128>}, {transform_indices = @transform_7, window_bounds = array<i64: 2, 256>}]} {
    %c0 = arith.constant 0 : index
    %c0_0 = arith.constant 0 : index
    %c0_1 = arith.constant 0 : index
    %0 = vector.load %arg1[%c0, %c0_0, %c0_1] : memref<2x8x16xf32, #tpu.memory_space<vmem>>, vector<2x8x16xf32>
    %c0_2 = arith.constant 0 : index
    %c0_3 = arith.constant 0 : index
    %1 = vector.load %arg2[%c0_2, %c0_3] : memref<64x8xbf16, #tpu.memory_space<vmem>>, vector<64x8xbf16>
    %c0_4 = arith.constant 0 : index
    %c0_5 = arith.constant 0 : index
    %2 = vector.load %arg4[%c0_4, %c0_5] : memref<8x8xf32, #tpu.memory_space<vmem>>, vector<8x8xf32>
    %c0_6 = arith.constant 0 : index
    %c0_7 = arith.constant 0 : index
    %3 = vector.load %arg6[%c0_6, %c0_7] : memref<48x128xbf16, #tpu.memory_space<vmem>>, vector<48x128xbf16>
    %c0_8 = arith.constant 0 : index
    %c0_9 = arith.constant 0 : index
    %4 = vector.load %arg3[%c0_8, %c0_9] : memref<1x8xf32, #tpu.memory_space<vmem>>, vector<1x8xf32>
    %5 = vector.shape_cast %4 : vector<1x8xf32> to vector<1x8xf32>
    %6 = vector.broadcast %5 : vector<1x8xf32> to vector<2x8xf32>
    %c0_10 = arith.constant 0 : index
    %c0_11 = arith.constant 0 : index
    %7 = vector.load %arg7[%c0_10, %c0_11] : memref<1x128xf32, #tpu.memory_space<vmem>>, vector<1x128xf32>
    %8 = vector.shape_cast %7 : vector<1x128xf32> to vector<1x128xf32>
    %9 = vector.broadcast %8 : vector<1x128xf32> to vector<2x128xf32>
    %c0_12 = arith.constant 0 : index
    %c0_13 = arith.constant 0 : index
    %10 = vector.load %arg5[%c0_12, %c0_13] : memref<8x1xf32, #tpu.memory_space<vmem>>, vector<8x1xf32>
    %11 = vector.shape_cast %10 : vector<8x1xf32> to vector<1x8x1xf32>
    %12 = vector.shape_cast %11 : vector<1x8x1xf32> to vector<1x8x1xf32>
    %13 = vector.broadcast %12 : vector<1x8x1xf32> to vector<2x8x16xf32>
    %cst = arith.constant dense<0.000000e+00> : vector<2x16x8xf32>
    %14 = tpu.matmul %0, %2, %cst {dimension_numbers = #tpu.dot_dimension_numbers<[1], [0], [0, 2], [1], [0, 0, 0, 2, 1, 1], [], []>} : vector<2x8x16xf32>, vector<8x8xf32>, vector<2x16x8xf32> -> vector<2x16x8xf32>
    %15 = tpu.transpose %14, [0, 2, 1] : vector<2x16x8xf32> -> vector<2x8x16xf32>
    %cst_14 = arith.constant 0.000000e+00 : f32
    %16 = vector.broadcast %cst_14 : f32 to vector<2x32xf32>
    %cst_15 = arith.constant 0.000000e+00 : f32
    %17 = vector.broadcast %cst_15 : f32 to vector<2x32xf32>
    %18 = tpu.concatenate %16, %17 in 1 : vector<2x32xf32>, vector<2x32xf32> -> vector<2x64xf32>
    %19 = arith.truncf %18 : vector<2x64xf32> to vector<2x64xbf16>
    %cst_16 = arith.constant dense<0.000000e+00> : vector<2x8xf32>
    %20 = tpu.matmul %19, %1, %cst_16 {dimension_numbers = #tpu.dot_dimension_numbers<[1], [0], [0], [1], [0, 0, 1, 1], [], []>} : vector<2x64xbf16>, vector<64x8xbf16>, vector<2x8xf32> -> vector<2x8xf32>
    %21 = arith.addf %20, %6 : vector<2x8xf32>
    %22 = vector.shape_cast %21 : vector<2x8xf32> to vector<2x8x1xf32>
    %23 = vector.broadcast %22 : vector<2x8x1xf32> to vector<2x8x16xf32>
    %24 = arith.addf %23, %15 : vector<2x8x16xf32>
    %25 = math.tanh %24 : vector<2x8x16xf32>
    %26 = arith.mulf %25, %13 : vector<2x8x16xf32>
    %cst_17 = arith.constant dense<0.000000e+00> : vector<2x16xf32>
    %27 = vector.multi_reduction <add>, %26, %cst_17 [1] : vector<2x8x16xf32> to vector<2x16xf32>
    %28 = math.exp %27 : vector<2x16xf32>
    %cst_18 = arith.constant dense<0.000000e+00> : vector<2xf32>
    %29 = vector.multi_reduction <add>, %28, %cst_18 [1] : vector<2x16xf32> to vector<2xf32>
    %30 = vector.shape_cast %29 : vector<2xf32> to vector<2x1xf32>
    %31 = tpu.reciprocal %30 {approx = true} : vector<2x1xf32> -> vector<2x1xf32>
    %32 = vector.broadcast %31 : vector<2x1xf32> to vector<2x16xf32>
    %33 = arith.mulf %28, %32 : vector<2x16xf32>
    %34 = vector.extract_strided_slice %0 {offsets = [0, 0, 0], sizes = [2, 1, 16], strides = [1, 1, 1]} : vector<2x8x16xf32> to vector<2x1x16xf32>
    %35 = vector.shape_cast %34 : vector<2x1x16xf32> to vector<2x16xf32>
    %36 = arith.mulf %33, %35 : vector<2x16xf32>
    %37 = tpu.concatenate %36, %16 in 1 : vector<2x16xf32>, vector<2x32xf32> -> vector<2x48xf32>
    %38 = arith.truncf %37 : vector<2x48xf32> to vector<2x48xbf16>
    %cst_19 = arith.constant dense<0.000000e+00> : vector<2x128xf32>
    %39 = tpu.matmul %38, %3, %cst_19 {dimension_numbers = #tpu.dot_dimension_numbers<[1], [0], [0], [1], [0, 0, 1, 1], [], []>} : vector<2x48xbf16>, vector<48x128xbf16>, vector<2x128xf32> -> vector<2x128xf32>
    %40 = arith.addf %39, %9 : vector<2x128xf32>
    %41 = arith.negf %40 : vector<2x128xf32>
    %42 = math.exp %41 : vector<2x128xf32>
    %cst_20 = arith.constant 1.000000e+00 : f32
    %43 = vector.broadcast %cst_20 : f32 to vector<2x128xf32>
    %44 = arith.addf %43, %42 : vector<2x128xf32>
    %45 = arith.divf %43, %44 : vector<2x128xf32>
    %46 = math.tanh %40 : vector<2x128xf32>
    %47 = vector.extract_strided_slice %45 {offsets = [0, 0], sizes = [2, 32], strides = [1, 1]} : vector<2x128xf32> to vector<2x32xf32>
    %48 = vector.extract_strided_slice %45 {offsets = [0, 32], sizes = [2, 32], strides = [1, 1]} : vector<2x128xf32> to vector<2x32xf32>
    %49 = vector.extract_strided_slice %46 {offsets = [0, 64], sizes = [2, 32], strides = [1, 1]} : vector<2x128xf32> to vector<2x32xf32>
    %50 = vector.extract_strided_slice %45 {offsets = [0, 96], sizes = [2, 32], strides = [1, 1]} : vector<2x128xf32> to vector<2x32xf32>
    %51 = arith.mulf %48, %17 : vector<2x32xf32>
    %52 = arith.mulf %47, %49 : vector<2x32xf32>
    %53 = arith.addf %51, %52 : vector<2x32xf32>
    %54 = math.tanh %53 : vector<2x32xf32>
    %55 = arith.mulf %50, %54 : vector<2x32xf32>
    %56 = tpu.concatenate %55, %53 in 1 : vector<2x32xf32>, vector<2x32xf32> -> vector<2x64xf32>
    %57 = arith.truncf %56 : vector<2x64xf32> to vector<2x64xbf16>
    %cst_21 = arith.constant dense<0.000000e+00> : vector<2x8xf32>
    %58 = tpu.matmul %57, %1, %cst_21 {dimension_numbers = #tpu.dot_dimension_numbers<[1], [0], [0], [1], [0, 0, 1, 1], [], []>} : vector<2x64xbf16>, vector<64x8xbf16>, vector<2x8xf32> -> vector<2x8xf32>
    %59 = arith.addf %58, %6 : vector<2x8xf32>
    %60 = vector.shape_cast %59 : vector<2x8xf32> to vector<2x8x1xf32>
    %61 = vector.broadcast %60 : vector<2x8x1xf32> to vector<2x8x16xf32>
    %62 = arith.addf %61, %15 : vector<2x8x16xf32>
    %63 = math.tanh %62 : vector<2x8x16xf32>
    %64 = arith.mulf %63, %13 : vector<2x8x16xf32>
    %cst_22 = arith.constant dense<0.000000e+00> : vector<2x16xf32>
    %65 = vector.multi_reduction <add>, %64, %cst_22 [1] : vector<2x8x16xf32> to vector<2x16xf32>
    %66 = math.exp %65 : vector<2x16xf32>
    %cst_23 = arith.constant dense<0.000000e+00> : vector<2xf32>
    %67 = vector.multi_reduction <add>, %66, %cst_23 [1] : vector<2x16xf32> to vector<2xf32>
    %68 = vector.shape_cast %67 : vector<2xf32> to vector<2x1xf32>
    %69 = tpu.reciprocal %68 {approx = true} : vector<2x1xf32> -> vector<2x1xf32>
    %70 = vector.broadcast %69 : vector<2x1xf32> to vector<2x16xf32>
    %71 = arith.mulf %66, %70 : vector<2x16xf32>
    %72 = vector.extract_strided_slice %0 {offsets = [0, 1, 0], sizes = [2, 1, 16], strides = [1, 1, 1]} : vector<2x8x16xf32> to vector<2x1x16xf32>
    %73 = vector.shape_cast %72 : vector<2x1x16xf32> to vector<2x16xf32>
    %74 = arith.mulf %71, %73 : vector<2x16xf32>
    %75 = tpu.concatenate %74, %55 in 1 : vector<2x16xf32>, vector<2x32xf32> -> vector<2x48xf32>
    %76 = arith.truncf %75 : vector<2x48xf32> to vector<2x48xbf16>
    %cst_24 = arith.constant dense<0.000000e+00> : vector<2x128xf32>
    %77 = tpu.matmul %76, %3, %cst_24 {dimension_numbers = #tpu.dot_dimension_numbers<[1], [0], [0], [1], [0, 0, 1, 1], [], []>} : vector<2x48xbf16>, vector<48x128xbf16>, vector<2x128xf32> -> vector<2x128xf32>
    %78 = arith.addf %77, %9 : vector<2x128xf32>
    %79 = arith.negf %78 : vector<2x128xf32>
    %80 = math.exp %79 : vector<2x128xf32>
    %cst_25 = arith.constant 1.000000e+00 : f32
    %81 = vector.broadcast %cst_25 : f32 to vector<2x128xf32>
    %82 = arith.addf %81, %80 : vector<2x128xf32>
    %83 = arith.divf %81, %82 : vector<2x128xf32>
    %84 = math.tanh %78 : vector<2x128xf32>
    %85 = vector.extract_strided_slice %83 {offsets = [0, 0], sizes = [2, 32], strides = [1, 1]} : vector<2x128xf32> to vector<2x32xf32>
    %86 = vector.extract_strided_slice %83 {offsets = [0, 32], sizes = [2, 32], strides = [1, 1]} : vector<2x128xf32> to vector<2x32xf32>
    %87 = vector.extract_strided_slice %84 {offsets = [0, 64], sizes = [2, 32], strides = [1, 1]} : vector<2x128xf32> to vector<2x32xf32>
    %88 = vector.extract_strided_slice %83 {offsets = [0, 96], sizes = [2, 32], strides = [1, 1]} : vector<2x128xf32> to vector<2x32xf32>
    %89 = arith.mulf %86, %53 : vector<2x32xf32>
    %90 = arith.mulf %85, %87 : vector<2x32xf32>
    %91 = arith.addf %89, %90 : vector<2x32xf32>
    %92 = math.tanh %91 : vector<2x32xf32>
    %93 = arith.mulf %88, %92 : vector<2x32xf32>
    %94 = tpu.concatenate %93, %91 in 1 : vector<2x32xf32>, vector<2x32xf32> -> vector<2x64xf32>
    %95 = arith.truncf %94 : vector<2x64xf32> to vector<2x64xbf16>
    %cst_26 = arith.constant dense<0.000000e+00> : vector<2x8xf32>
    %96 = tpu.matmul %95, %1, %cst_26 {dimension_numbers = #tpu.dot_dimension_numbers<[1], [0], [0], [1], [0, 0, 1, 1], [], []>} : vector<2x64xbf16>, vector<64x8xbf16>, vector<2x8xf32> -> vector<2x8xf32>
    %97 = arith.addf %96, %6 : vector<2x8xf32>
    %98 = vector.shape_cast %97 : vector<2x8xf32> to vector<2x8x1xf32>
    %99 = vector.broadcast %98 : vector<2x8x1xf32> to vector<2x8x16xf32>
    %100 = arith.addf %99, %15 : vector<2x8x16xf32>
    %101 = math.tanh %100 : vector<2x8x16xf32>
    %102 = arith.mulf %101, %13 : vector<2x8x16xf32>
    %cst_27 = arith.constant dense<0.000000e+00> : vector<2x16xf32>
    %103 = vector.multi_reduction <add>, %102, %cst_27 [1] : vector<2x8x16xf32> to vector<2x16xf32>
    %104 = math.exp %103 : vector<2x16xf32>
    %cst_28 = arith.constant dense<0.000000e+00> : vector<2xf32>
    %105 = vector.multi_reduction <add>, %104, %cst_28 [1] : vector<2x16xf32> to vector<2xf32>
    %106 = vector.shape_cast %105 : vector<2xf32> to vector<2x1xf32>
    %107 = tpu.reciprocal %106 {approx = true} : vector<2x1xf32> -> vector<2x1xf32>
    %108 = vector.broadcast %107 : vector<2x1xf32> to vector<2x16xf32>
    %109 = arith.mulf %104, %108 : vector<2x16xf32>
    %110 = vector.extract_strided_slice %0 {offsets = [0, 2, 0], sizes = [2, 1, 16], strides = [1, 1, 1]} : vector<2x8x16xf32> to vector<2x1x16xf32>
    %111 = vector.shape_cast %110 : vector<2x1x16xf32> to vector<2x16xf32>
    %112 = arith.mulf %109, %111 : vector<2x16xf32>
    %113 = tpu.concatenate %112, %93 in 1 : vector<2x16xf32>, vector<2x32xf32> -> vector<2x48xf32>
    %114 = arith.truncf %113 : vector<2x48xf32> to vector<2x48xbf16>
    %cst_29 = arith.constant dense<0.000000e+00> : vector<2x128xf32>
    %115 = tpu.matmul %114, %3, %cst_29 {dimension_numbers = #tpu.dot_dimension_numbers<[1], [0], [0], [1], [0, 0, 1, 1], [], []>} : vector<2x48xbf16>, vector<48x128xbf16>, vector<2x128xf32> -> vector<2x128xf32>
    %116 = arith.addf %115, %9 : vector<2x128xf32>
    %117 = arith.negf %116 : vector<2x128xf32>
    %118 = math.exp %117 : vector<2x128xf32>
    %cst_30 = arith.constant 1.000000e+00 : f32
    %119 = vector.broadcast %cst_30 : f32 to vector<2x128xf32>
    %120 = arith.addf %119, %118 : vector<2x128xf32>
    %121 = arith.divf %119, %120 : vector<2x128xf32>
    %122 = math.tanh %116 : vector<2x128xf32>
    %123 = vector.extract_strided_slice %121 {offsets = [0, 0], sizes = [2, 32], strides = [1, 1]} : vector<2x128xf32> to vector<2x32xf32>
    %124 = vector.extract_strided_slice %121 {offsets = [0, 32], sizes = [2, 32], strides = [1, 1]} : vector<2x128xf32> to vector<2x32xf32>
    %125 = vector.extract_strided_slice %122 {offsets = [0, 64], sizes = [2, 32], strides = [1, 1]} : vector<2x128xf32> to vector<2x32xf32>
    %126 = vector.extract_strided_slice %121 {offsets = [0, 96], sizes = [2, 32], strides = [1, 1]} : vector<2x128xf32> to vector<2x32xf32>
    %127 = arith.mulf %124, %91 : vector<2x32xf32>
    %128 = arith.mulf %123, %125 : vector<2x32xf32>
    %129 = arith.addf %127, %128 : vector<2x32xf32>
    %130 = math.tanh %129 : vector<2x32xf32>
    %131 = arith.mulf %126, %130 : vector<2x32xf32>
    %132 = tpu.concatenate %131, %129 in 1 : vector<2x32xf32>, vector<2x32xf32> -> vector<2x64xf32>
    %133 = arith.truncf %132 : vector<2x64xf32> to vector<2x64xbf16>
    %cst_31 = arith.constant dense<0.000000e+00> : vector<2x8xf32>
    %134 = tpu.matmul %133, %1, %cst_31 {dimension_numbers = #tpu.dot_dimension_numbers<[1], [0], [0], [1], [0, 0, 1, 1], [], []>} : vector<2x64xbf16>, vector<64x8xbf16>, vector<2x8xf32> -> vector<2x8xf32>
    %135 = arith.addf %134, %6 : vector<2x8xf32>
    %136 = vector.shape_cast %135 : vector<2x8xf32> to vector<2x8x1xf32>
    %137 = vector.broadcast %136 : vector<2x8x1xf32> to vector<2x8x16xf32>
    %138 = arith.addf %137, %15 : vector<2x8x16xf32>
    %139 = math.tanh %138 : vector<2x8x16xf32>
    %140 = arith.mulf %139, %13 : vector<2x8x16xf32>
    %cst_32 = arith.constant dense<0.000000e+00> : vector<2x16xf32>
    %141 = vector.multi_reduction <add>, %140, %cst_32 [1] : vector<2x8x16xf32> to vector<2x16xf32>
    %142 = math.exp %141 : vector<2x16xf32>
    %cst_33 = arith.constant dense<0.000000e+00> : vector<2xf32>
    %143 = vector.multi_reduction <add>, %142, %cst_33 [1] : vector<2x16xf32> to vector<2xf32>
    %144 = vector.shape_cast %143 : vector<2xf32> to vector<2x1xf32>
    %145 = tpu.reciprocal %144 {approx = true} : vector<2x1xf32> -> vector<2x1xf32>
    %146 = vector.broadcast %145 : vector<2x1xf32> to vector<2x16xf32>
    %147 = arith.mulf %142, %146 : vector<2x16xf32>
    %148 = vector.extract_strided_slice %0 {offsets = [0, 3, 0], sizes = [2, 1, 16], strides = [1, 1, 1]} : vector<2x8x16xf32> to vector<2x1x16xf32>
    %149 = vector.shape_cast %148 : vector<2x1x16xf32> to vector<2x16xf32>
    %150 = arith.mulf %147, %149 : vector<2x16xf32>
    %151 = tpu.concatenate %150, %131 in 1 : vector<2x16xf32>, vector<2x32xf32> -> vector<2x48xf32>
    %152 = arith.truncf %151 : vector<2x48xf32> to vector<2x48xbf16>
    %cst_34 = arith.constant dense<0.000000e+00> : vector<2x128xf32>
    %153 = tpu.matmul %152, %3, %cst_34 {dimension_numbers = #tpu.dot_dimension_numbers<[1], [0], [0], [1], [0, 0, 1, 1], [], []>} : vector<2x48xbf16>, vector<48x128xbf16>, vector<2x128xf32> -> vector<2x128xf32>
    %154 = arith.addf %153, %9 : vector<2x128xf32>
    %155 = arith.negf %154 : vector<2x128xf32>
    %156 = math.exp %155 : vector<2x128xf32>
    %cst_35 = arith.constant 1.000000e+00 : f32
    %157 = vector.broadcast %cst_35 : f32 to vector<2x128xf32>
    %158 = arith.addf %157, %156 : vector<2x128xf32>
    %159 = arith.divf %157, %158 : vector<2x128xf32>
    %160 = math.tanh %154 : vector<2x128xf32>
    %161 = vector.extract_strided_slice %159 {offsets = [0, 0], sizes = [2, 32], strides = [1, 1]} : vector<2x128xf32> to vector<2x32xf32>
    %162 = vector.extract_strided_slice %159 {offsets = [0, 32], sizes = [2, 32], strides = [1, 1]} : vector<2x128xf32> to vector<2x32xf32>
    %163 = vector.extract_strided_slice %160 {offsets = [0, 64], sizes = [2, 32], strides = [1, 1]} : vector<2x128xf32> to vector<2x32xf32>
    %164 = vector.extract_strided_slice %159 {offsets = [0, 96], sizes = [2, 32], strides = [1, 1]} : vector<2x128xf32> to vector<2x32xf32>
    %165 = arith.mulf %162, %129 : vector<2x32xf32>
    %166 = arith.mulf %161, %163 : vector<2x32xf32>
    %167 = arith.addf %165, %166 : vector<2x32xf32>
    %168 = math.tanh %167 : vector<2x32xf32>
    %169 = arith.mulf %164, %168 : vector<2x32xf32>
    %170 = tpu.concatenate %169, %167 in 1 : vector<2x32xf32>, vector<2x32xf32> -> vector<2x64xf32>
    %171 = arith.truncf %170 : vector<2x64xf32> to vector<2x64xbf16>
    %cst_36 = arith.constant dense<0.000000e+00> : vector<2x8xf32>
    %172 = tpu.matmul %171, %1, %cst_36 {dimension_numbers = #tpu.dot_dimension_numbers<[1], [0], [0], [1], [0, 0, 1, 1], [], []>} : vector<2x64xbf16>, vector<64x8xbf16>, vector<2x8xf32> -> vector<2x8xf32>
    %173 = arith.addf %172, %6 : vector<2x8xf32>
    %174 = vector.shape_cast %173 : vector<2x8xf32> to vector<2x8x1xf32>
    %175 = vector.broadcast %174 : vector<2x8x1xf32> to vector<2x8x16xf32>
    %176 = arith.addf %175, %15 : vector<2x8x16xf32>
    %177 = math.tanh %176 : vector<2x8x16xf32>
    %178 = arith.mulf %177, %13 : vector<2x8x16xf32>
    %cst_37 = arith.constant dense<0.000000e+00> : vector<2x16xf32>
    %179 = vector.multi_reduction <add>, %178, %cst_37 [1] : vector<2x8x16xf32> to vector<2x16xf32>
    %180 = math.exp %179 : vector<2x16xf32>
    %cst_38 = arith.constant dense<0.000000e+00> : vector<2xf32>
    %181 = vector.multi_reduction <add>, %180, %cst_38 [1] : vector<2x16xf32> to vector<2xf32>
    %182 = vector.shape_cast %181 : vector<2xf32> to vector<2x1xf32>
    %183 = tpu.reciprocal %182 {approx = true} : vector<2x1xf32> -> vector<2x1xf32>
    %184 = vector.broadcast %183 : vector<2x1xf32> to vector<2x16xf32>
    %185 = arith.mulf %180, %184 : vector<2x16xf32>
    %186 = vector.extract_strided_slice %0 {offsets = [0, 4, 0], sizes = [2, 1, 16], strides = [1, 1, 1]} : vector<2x8x16xf32> to vector<2x1x16xf32>
    %187 = vector.shape_cast %186 : vector<2x1x16xf32> to vector<2x16xf32>
    %188 = arith.mulf %185, %187 : vector<2x16xf32>
    %189 = tpu.concatenate %188, %169 in 1 : vector<2x16xf32>, vector<2x32xf32> -> vector<2x48xf32>
    %190 = arith.truncf %189 : vector<2x48xf32> to vector<2x48xbf16>
    %cst_39 = arith.constant dense<0.000000e+00> : vector<2x128xf32>
    %191 = tpu.matmul %190, %3, %cst_39 {dimension_numbers = #tpu.dot_dimension_numbers<[1], [0], [0], [1], [0, 0, 1, 1], [], []>} : vector<2x48xbf16>, vector<48x128xbf16>, vector<2x128xf32> -> vector<2x128xf32>
    %192 = arith.addf %191, %9 : vector<2x128xf32>
    %193 = arith.negf %192 : vector<2x128xf32>
    %194 = math.exp %193 : vector<2x128xf32>
    %cst_40 = arith.constant 1.000000e+00 : f32
    %195 = vector.broadcast %cst_40 : f32 to vector<2x128xf32>
    %196 = arith.addf %195, %194 : vector<2x128xf32>
    %197 = arith.divf %195, %196 : vector<2x128xf32>
    %198 = math.tanh %192 : vector<2x128xf32>
    %199 = vector.extract_strided_slice %197 {offsets = [0, 0], sizes = [2, 32], strides = [1, 1]} : vector<2x128xf32> to vector<2x32xf32>
    %200 = vector.extract_strided_slice %197 {offsets = [0, 32], sizes = [2, 32], strides = [1, 1]} : vector<2x128xf32> to vector<2x32xf32>
    %201 = vector.extract_strided_slice %198 {offsets = [0, 64], sizes = [2, 32], strides = [1, 1]} : vector<2x128xf32> to vector<2x32xf32>
    %202 = vector.extract_strided_slice %197 {offsets = [0, 96], sizes = [2, 32], strides = [1, 1]} : vector<2x128xf32> to vector<2x32xf32>
    %203 = arith.mulf %200, %167 : vector<2x32xf32>
    %204 = arith.mulf %199, %201 : vector<2x32xf32>
    %205 = arith.addf %203, %204 : vector<2x32xf32>
    %206 = math.tanh %205 : vector<2x32xf32>
    %207 = arith.mulf %202, %206 : vector<2x32xf32>
    %208 = tpu.concatenate %207, %205 in 1 : vector<2x32xf32>, vector<2x32xf32> -> vector<2x64xf32>
    %209 = arith.truncf %208 : vector<2x64xf32> to vector<2x64xbf16>
    %cst_41 = arith.constant dense<0.000000e+00> : vector<2x8xf32>
    %210 = tpu.matmul %209, %1, %cst_41 {dimension_numbers = #tpu.dot_dimension_numbers<[1], [0], [0], [1], [0, 0, 1, 1], [], []>} : vector<2x64xbf16>, vector<64x8xbf16>, vector<2x8xf32> -> vector<2x8xf32>
    %211 = arith.addf %210, %6 : vector<2x8xf32>
    %212 = vector.shape_cast %211 : vector<2x8xf32> to vector<2x8x1xf32>
    %213 = vector.broadcast %212 : vector<2x8x1xf32> to vector<2x8x16xf32>
    %214 = arith.addf %213, %15 : vector<2x8x16xf32>
    %215 = math.tanh %214 : vector<2x8x16xf32>
    %216 = arith.mulf %215, %13 : vector<2x8x16xf32>
    %cst_42 = arith.constant dense<0.000000e+00> : vector<2x16xf32>
    %217 = vector.multi_reduction <add>, %216, %cst_42 [1] : vector<2x8x16xf32> to vector<2x16xf32>
    %218 = math.exp %217 : vector<2x16xf32>
    %cst_43 = arith.constant dense<0.000000e+00> : vector<2xf32>
    %219 = vector.multi_reduction <add>, %218, %cst_43 [1] : vector<2x16xf32> to vector<2xf32>
    %220 = vector.shape_cast %219 : vector<2xf32> to vector<2x1xf32>
    %221 = tpu.reciprocal %220 {approx = true} : vector<2x1xf32> -> vector<2x1xf32>
    %222 = vector.broadcast %221 : vector<2x1xf32> to vector<2x16xf32>
    %223 = arith.mulf %218, %222 : vector<2x16xf32>
    %224 = vector.extract_strided_slice %0 {offsets = [0, 5, 0], sizes = [2, 1, 16], strides = [1, 1, 1]} : vector<2x8x16xf32> to vector<2x1x16xf32>
    %225 = vector.shape_cast %224 : vector<2x1x16xf32> to vector<2x16xf32>
    %226 = arith.mulf %223, %225 : vector<2x16xf32>
    %227 = tpu.concatenate %226, %207 in 1 : vector<2x16xf32>, vector<2x32xf32> -> vector<2x48xf32>
    %228 = arith.truncf %227 : vector<2x48xf32> to vector<2x48xbf16>
    %cst_44 = arith.constant dense<0.000000e+00> : vector<2x128xf32>
    %229 = tpu.matmul %228, %3, %cst_44 {dimension_numbers = #tpu.dot_dimension_numbers<[1], [0], [0], [1], [0, 0, 1, 1], [], []>} : vector<2x48xbf16>, vector<48x128xbf16>, vector<2x128xf32> -> vector<2x128xf32>
    %230 = arith.addf %229, %9 : vector<2x128xf32>
    %231 = arith.negf %230 : vector<2x128xf32>
    %232 = math.exp %231 : vector<2x128xf32>
    %cst_45 = arith.constant 1.000000e+00 : f32
    %233 = vector.broadcast %cst_45 : f32 to vector<2x128xf32>
    %234 = arith.addf %233, %232 : vector<2x128xf32>
    %235 = arith.divf %233, %234 : vector<2x128xf32>
    %236 = math.tanh %230 : vector<2x128xf32>
    %237 = vector.extract_strided_slice %235 {offsets = [0, 0], sizes = [2, 32], strides = [1, 1]} : vector<2x128xf32> to vector<2x32xf32>
    %238 = vector.extract_strided_slice %235 {offsets = [0, 32], sizes = [2, 32], strides = [1, 1]} : vector<2x128xf32> to vector<2x32xf32>
    %239 = vector.extract_strided_slice %236 {offsets = [0, 64], sizes = [2, 32], strides = [1, 1]} : vector<2x128xf32> to vector<2x32xf32>
    %240 = vector.extract_strided_slice %235 {offsets = [0, 96], sizes = [2, 32], strides = [1, 1]} : vector<2x128xf32> to vector<2x32xf32>
    %241 = arith.mulf %238, %205 : vector<2x32xf32>
    %242 = arith.mulf %237, %239 : vector<2x32xf32>
    %243 = arith.addf %241, %242 : vector<2x32xf32>
    %244 = math.tanh %243 : vector<2x32xf32>
    %245 = arith.mulf %240, %244 : vector<2x32xf32>
    %246 = tpu.concatenate %245, %243 in 1 : vector<2x32xf32>, vector<2x32xf32> -> vector<2x64xf32>
    %247 = arith.truncf %246 : vector<2x64xf32> to vector<2x64xbf16>
    %cst_46 = arith.constant dense<0.000000e+00> : vector<2x8xf32>
    %248 = tpu.matmul %247, %1, %cst_46 {dimension_numbers = #tpu.dot_dimension_numbers<[1], [0], [0], [1], [0, 0, 1, 1], [], []>} : vector<2x64xbf16>, vector<64x8xbf16>, vector<2x8xf32> -> vector<2x8xf32>
    %249 = arith.addf %248, %6 : vector<2x8xf32>
    %250 = vector.shape_cast %249 : vector<2x8xf32> to vector<2x8x1xf32>
    %251 = vector.broadcast %250 : vector<2x8x1xf32> to vector<2x8x16xf32>
    %252 = arith.addf %251, %15 : vector<2x8x16xf32>
    %253 = math.tanh %252 : vector<2x8x16xf32>
    %254 = arith.mulf %253, %13 : vector<2x8x16xf32>
    %cst_47 = arith.constant dense<0.000000e+00> : vector<2x16xf32>
    %255 = vector.multi_reduction <add>, %254, %cst_47 [1] : vector<2x8x16xf32> to vector<2x16xf32>
    %256 = math.exp %255 : vector<2x16xf32>
    %cst_48 = arith.constant dense<0.000000e+00> : vector<2xf32>
    %257 = vector.multi_reduction <add>, %256, %cst_48 [1] : vector<2x16xf32> to vector<2xf32>
    %258 = vector.shape_cast %257 : vector<2xf32> to vector<2x1xf32>
    %259 = tpu.reciprocal %258 {approx = true} : vector<2x1xf32> -> vector<2x1xf32>
    %260 = vector.broadcast %259 : vector<2x1xf32> to vector<2x16xf32>
    %261 = arith.mulf %256, %260 : vector<2x16xf32>
    %262 = vector.extract_strided_slice %0 {offsets = [0, 6, 0], sizes = [2, 1, 16], strides = [1, 1, 1]} : vector<2x8x16xf32> to vector<2x1x16xf32>
    %263 = vector.shape_cast %262 : vector<2x1x16xf32> to vector<2x16xf32>
    %264 = arith.mulf %261, %263 : vector<2x16xf32>
    %265 = tpu.concatenate %264, %245 in 1 : vector<2x16xf32>, vector<2x32xf32> -> vector<2x48xf32>
    %266 = arith.truncf %265 : vector<2x48xf32> to vector<2x48xbf16>
    %cst_49 = arith.constant dense<0.000000e+00> : vector<2x128xf32>
    %267 = tpu.matmul %266, %3, %cst_49 {dimension_numbers = #tpu.dot_dimension_numbers<[1], [0], [0], [1], [0, 0, 1, 1], [], []>} : vector<2x48xbf16>, vector<48x128xbf16>, vector<2x128xf32> -> vector<2x128xf32>
    %268 = arith.addf %267, %9 : vector<2x128xf32>
    %269 = arith.negf %268 : vector<2x128xf32>
    %270 = math.exp %269 : vector<2x128xf32>
    %cst_50 = arith.constant 1.000000e+00 : f32
    %271 = vector.broadcast %cst_50 : f32 to vector<2x128xf32>
    %272 = arith.addf %271, %270 : vector<2x128xf32>
    %273 = arith.divf %271, %272 : vector<2x128xf32>
    %274 = math.tanh %268 : vector<2x128xf32>
    %275 = vector.extract_strided_slice %273 {offsets = [0, 0], sizes = [2, 32], strides = [1, 1]} : vector<2x128xf32> to vector<2x32xf32>
    %276 = vector.extract_strided_slice %273 {offsets = [0, 32], sizes = [2, 32], strides = [1, 1]} : vector<2x128xf32> to vector<2x32xf32>
    %277 = vector.extract_strided_slice %274 {offsets = [0, 64], sizes = [2, 32], strides = [1, 1]} : vector<2x128xf32> to vector<2x32xf32>
    %278 = vector.extract_strided_slice %273 {offsets = [0, 96], sizes = [2, 32], strides = [1, 1]} : vector<2x128xf32> to vector<2x32xf32>
    %279 = arith.mulf %276, %243 : vector<2x32xf32>
    %280 = arith.mulf %275, %277 : vector<2x32xf32>
    %281 = arith.addf %279, %280 : vector<2x32xf32>
    %282 = math.tanh %281 : vector<2x32xf32>
    %283 = arith.mulf %278, %282 : vector<2x32xf32>
    %284 = tpu.concatenate %283, %281 in 1 : vector<2x32xf32>, vector<2x32xf32> -> vector<2x64xf32>
    %285 = arith.truncf %284 : vector<2x64xf32> to vector<2x64xbf16>
    %cst_51 = arith.constant dense<0.000000e+00> : vector<2x8xf32>
    %286 = tpu.matmul %285, %1, %cst_51 {dimension_numbers = #tpu.dot_dimension_numbers<[1], [0], [0], [1], [0, 0, 1, 1], [], []>} : vector<2x64xbf16>, vector<64x8xbf16>, vector<2x8xf32> -> vector<2x8xf32>
    %287 = arith.addf %286, %6 : vector<2x8xf32>
    %288 = vector.shape_cast %287 : vector<2x8xf32> to vector<2x8x1xf32>
    %289 = vector.broadcast %288 : vector<2x8x1xf32> to vector<2x8x16xf32>
    %290 = arith.addf %289, %15 : vector<2x8x16xf32>
    %291 = math.tanh %290 : vector<2x8x16xf32>
    %292 = arith.mulf %291, %13 : vector<2x8x16xf32>
    %cst_52 = arith.constant dense<0.000000e+00> : vector<2x16xf32>
    %293 = vector.multi_reduction <add>, %292, %cst_52 [1] : vector<2x8x16xf32> to vector<2x16xf32>
    %294 = math.exp %293 : vector<2x16xf32>
    %cst_53 = arith.constant dense<0.000000e+00> : vector<2xf32>
    %295 = vector.multi_reduction <add>, %294, %cst_53 [1] : vector<2x16xf32> to vector<2xf32>
    %296 = vector.shape_cast %295 : vector<2xf32> to vector<2x1xf32>
    %297 = tpu.reciprocal %296 {approx = true} : vector<2x1xf32> -> vector<2x1xf32>
    %298 = vector.broadcast %297 : vector<2x1xf32> to vector<2x16xf32>
    %299 = arith.mulf %294, %298 : vector<2x16xf32>
    %300 = vector.extract_strided_slice %0 {offsets = [0, 7, 0], sizes = [2, 1, 16], strides = [1, 1, 1]} : vector<2x8x16xf32> to vector<2x1x16xf32>
    %301 = vector.shape_cast %300 : vector<2x1x16xf32> to vector<2x16xf32>
    %302 = arith.mulf %299, %301 : vector<2x16xf32>
    %303 = tpu.concatenate %302, %283 in 1 : vector<2x16xf32>, vector<2x32xf32> -> vector<2x48xf32>
    %304 = arith.truncf %303 : vector<2x48xf32> to vector<2x48xbf16>
    %cst_54 = arith.constant dense<0.000000e+00> : vector<2x128xf32>
    %305 = tpu.matmul %304, %3, %cst_54 {dimension_numbers = #tpu.dot_dimension_numbers<[1], [0], [0], [1], [0, 0, 1, 1], [], []>} : vector<2x48xbf16>, vector<48x128xbf16>, vector<2x128xf32> -> vector<2x128xf32>
    %306 = arith.addf %305, %9 : vector<2x128xf32>
    %307 = arith.negf %306 : vector<2x128xf32>
    %308 = math.exp %307 : vector<2x128xf32>
    %cst_55 = arith.constant 1.000000e+00 : f32
    %309 = vector.broadcast %cst_55 : f32 to vector<2x128xf32>
    %310 = arith.addf %309, %308 : vector<2x128xf32>
    %311 = arith.divf %309, %310 : vector<2x128xf32>
    %312 = math.tanh %306 : vector<2x128xf32>
    %313 = vector.extract_strided_slice %311 {offsets = [0, 0], sizes = [2, 32], strides = [1, 1]} : vector<2x128xf32> to vector<2x32xf32>
    %314 = vector.extract_strided_slice %311 {offsets = [0, 32], sizes = [2, 32], strides = [1, 1]} : vector<2x128xf32> to vector<2x32xf32>
    %315 = vector.extract_strided_slice %312 {offsets = [0, 64], sizes = [2, 32], strides = [1, 1]} : vector<2x128xf32> to vector<2x32xf32>
    %316 = vector.extract_strided_slice %311 {offsets = [0, 96], sizes = [2, 32], strides = [1, 1]} : vector<2x128xf32> to vector<2x32xf32>
    %317 = arith.mulf %314, %281 : vector<2x32xf32>
    %318 = arith.mulf %313, %315 : vector<2x32xf32>
    %319 = arith.addf %317, %318 : vector<2x32xf32>
    %320 = math.tanh %319 : vector<2x32xf32>
    %321 = arith.mulf %316, %320 : vector<2x32xf32>
    %322 = tpu.concatenate %55, %93, %131, %169, %207, %245, %283, %321 in 1 : vector<2x32xf32>, vector<2x32xf32>, vector<2x32xf32>, vector<2x32xf32>, vector<2x32xf32>, vector<2x32xf32>, vector<2x32xf32>, vector<2x32xf32> -> vector<2x256xf32>
    %c0_56 = arith.constant 0 : index
    %c0_57 = arith.constant 0 : index
    %323 = vector.load %arg8[%c0_56, %c0_57] : memref<2x256xf32, #tpu.memory_space<vmem>>, vector<2x256xf32>
    tpu.vector_store %arg8[%c0_56, %c0_57], %322 {strides = array<i32>} : memref<2x256xf32, #tpu.memory_space<vmem>>, vector<2x256xf32>,
    return
  }
  func.func @transform_0(%arg0: i32) -> (i32, i32, i32) {
    %c0_i32 = arith.constant 0 : i32
    %c0_i32_0 = arith.constant 0 : i32
    %c0_i32_1 = arith.constant 0 : i32
    return %arg0, %c0_i32, %c0_i32_0 : i32, i32, i32
  }
  func.func @transform_1(%arg0: i32) -> (i32, i32) {
    %c0_i32 = arith.constant 0 : i32
    %c0_i32_0 = arith.constant 0 : i32
    %c0_i32_1 = arith.constant 0 : i32
    return %c0_i32, %c0_i32_0 : i32, i32
  }
  func.func @transform_2(%arg0: i32) -> (i32, i32) {
    %c0_i32 = arith.constant 0 : i32
    %c0_i32_0 = arith.constant 0 : i32
    %c0_i32_1 = arith.constant 0 : i32
    return %c0_i32, %c0_i32_0 : i32, i32
  }
  func.func @transform_3(%arg0: i32) -> (i32, i32) {
    %c0_i32 = arith.constant 0 : i32
    %c0_i32_0 = arith.constant 0 : i32
    %c0_i32_1 = arith.constant 0 : i32
    return %c0_i32, %c0_i32_0 : i32, i32
  }
  func.func @transform_4(%arg0: i32) -> (i32, i32) {
    %c0_i32 = arith.constant 0 : i32
    %c0_i32_0 = arith.constant 0 : i32
    %c0_i32_1 = arith.constant 0 : i32
    return %c0_i32, %c0_i32_0 : i32, i32
  }
  func.func @transform_5(%arg0: i32) -> (i32, i32) {
    %c0_i32 = arith.constant 0 : i32
    %c0_i32_0 = arith.constant 0 : i32
    %c0_i32_1 = arith.constant 0 : i32
    return %c0_i32, %c0_i32_0 : i32, i32
  }
  func.func @transform_6(%arg0: i32) -> (i32, i32) {
    %c0_i32 = arith.constant 0 : i32
    %c0_i32_0 = arith.constant 0 : i32
    %c0_i32_1 = arith.constant 0 : i32
    return %c0_i32, %c0_i32_0 : i32, i32
  }
  func.func @transform_7(%arg0: i32) -> (i32, i32) {
    %c0_i32 = arith.constant 0 : i32
    %c0_i32_0 = arith.constant 0 : i32
    return %arg0, %c0_i32 : i32, i32
  }
}

</mosaic_0001>

<bundles_post_ra>
// kernel: input_attention_encoder.1
= control target key start
LH: loop header
LB: loop body
LE: loop exit
PB: predicated region body
PF: predicated region fallthrough
CT: control target
= control target key end

     0   :  { %v2305_v1 = vmov 0.0   ;;  %vm2306_vm0 = vmmov 0   ;;  %v2307_v8 = vmov 0   ;;  %v2308_v10 = vmov 0.0|0.0   ;;  %s2309_s25 = smov 64   ;;  %s2310_s26 = smov 32   ;;  %s2883_s0 = inlined_call_operand.vmem [shape: f32[2,8,16], index: 0, kind: input, shape index: {}]   ;;  %s2884_s1 = inlined_call_operand.vmem [shape: bf16[64,8], index: 1, kind: input, shape index: {}]   ;;  %s2885_s3 = inlined_call_operand.vmem [shape: f32[8,8], index: 3, kind: input, shape index: {}]   ;;  %s2886_s4 = inlined_call_operand.vmem [shape: f32[8,1], index: 4, kind: input, shape index: {}]   ;;  %s2887_s2 = inlined_call_operand.vmem [shape: f32[1,8], index: 2, kind: input, shape index: {}]   ;;  %s2888_s5 = inlined_call_operand.vmem [shape: bf16[48,128], index: 5, kind: input, shape index: {}]   ;;  %s2889_s6 = inlined_call_operand.vmem [shape: f32[1,128], index: 6, kind: input, shape index: {}]   ;;  %s2890_s7 = inlined_call_operand.vmem [shape: f32[2,256], index: 7, kind: output, shape index: {}]  }
   0x1   :  { %v2356_v0 = vld [vmem:[%s2883_s0] sm:$0xff]  ;;  %1957 = vmatprep.subr.bf16.mxu1 %v2305_v1  ;;  %1965 = vmatprep.mubr.msk.bf16.mxu1 %vm2306_vm0, %v2305_v1  ;;  %v2370_v3 = vld [vmem:[%s2883_s0 + $0x8] sm:$0xff]  ;;  %v2387_v6 = vld [vmem:[%s2884_s1 + $0x10] sm:$0xff]   ;;  %vm128_vm1 = vcmask 64512   ;;  %v359_v15 = vlaneseq  ;;  %vm379_vm2 = vcmask 130048   ;;  %vm400_vm3 = vcmask 1041409  }
   0x2   :  { %64 = vxpose.xlu0.b32.start.end [1/1] (short) (narrow) %v2356_v0, 16  ;;  %v2365_v2 = vld [vmem:[%s2884_s1] sm:$0xff]   ;;  %v2376_v4 = vld [vmem:[%s2884_s1 + $0x8] sm:$0xff]   ;;  %v2395_v7 = vld [vmem:[%s2884_s1 + $0x18] sm:$0xff]   ;;  %2141 = vset.pattern.permute.xlu1 %v2307_v8  ;;  %vm403_vm4 = vcmask 123904   ;;  %vm441_vm5 = vcmask 392192  }
   0x3   :  { %1958 = vmatpush3.bf16.msra.mxu1 %v2365_v2  ;;  %v37_v5 = vld [vmem:[%s2885_s3] sm:$0xff]  ;;  %v360_v16 = vshrl.u32 %v359_v15, 7  ;;  %v2445_v63 = vld [vmem:[%s2888_s5 + $0x8] sm:$0xff]   ;;  %vm513_vm6 = vcmask 261120   ;;  %vm315_vm7 = vcmask 523264   ;;  %s2311_s27 = smov 48  }
   0x4   :  { %1959 = vmatprep.subr.bf16.mxu1 %v2305_v1  ;;  %1949 = vmatprep.subr.mxu0 %v37_v5  ;;  %v58_v9 = vld [vmem:[%s2886_s4] sm:$0xff]  ;;  %vm1814_vm8 = vcmask 785408  }
   0x5   :  { %1950 = vmatpush3.msra.mxu0 %v37_v5  ;;  %61 = vperm.xlu1 %2141, %v58_v9   ;;  %v2410_v17 = vld [vmem:[%s2887_s2] ss:$0 sm:$0xff]  ;;  %v2412_v18 = vsub.s32 0, %v360_v16  ;;  %v2415_v22 = vsub.s32 1, %v360_v16  ;;  %v2454_v5 = vld [vmem:[%s2888_s5 + $0x10] sm:$0xff]  }
   0x6   :  { %1969 = vmatprep.subr.bf16.mxu0 %v2305_v1  ;;  %v2436_v62 = vld [vmem:[%s2888_s5] sm:$0xff]  }
   0x7   :  { %96 = vxpose.xlu0.b32.start.end [1/1] (short) (narrow) %v2370_v3, 16  ;;  %1960 = vmatpush3.bf16.msra.mxu1 %v2376_v4 }
   0x8   :  { %1961 = vmatprep.subr.bf16.mxu1 %v2305_v1 }
   0xb   :  { %1962 = vmatpush3.bf16.msra.mxu1 %v2387_v6 }
   0xc   :  { %1963 = vmatprep.subr.bf16.mxu1 %v2305_v1 }
   0xf   :  { %1964 = vmatpush3.bf16.msra.mxu1 %v2395_v7 }
  0x10   :  { %1991 = vmatprep.subr.bf16.mxu1 %v2305_v1 }
  0x12   :  { %1966 = vmatmul.mubr.bf16.vlgmr.msra.gmra.mrb[0].mxu1 %v2308_v10 }
  0x13   :  { %1997 = vmatprep.mubr.msk.bf16.mxu1 %vm2306_vm0, %v2305_v1  ;;  %1992 = vmatpush3.bf16.msra.mxu1 %v2436_v62 }
  0x14   :  { %1993 = vmatprep.subr.bf16.mxu1 %v2305_v1 }
  0x17   :  { %1994 = vmatpush3.bf16.msra.mxu1 %v2445_v63 }
  0x18   :  { %1995 = vmatprep.subr.bf16.mxu1 %v2305_v1 }
  0x1b   :  { %1996 = vmatpush3.bf16.msra.mxu1 %v2454_v5 }
  0x1c   :  { %2001 = vmatprep.subr.bf16.mxu1 %v2305_v1 }
  0x82   :  { %v80_v11 = vpop.trf.xlu0 }
  0x83   :  { %1951 = vmatprep.mubr.msk.f32.mxu0 %vm128_vm1, %v80_v11 }
  0x84   :  { %v2419_v31 = vpop.permute.xlu1 %61 }
  0x86   :  { %v81_v12 = vpop.trf.xlu0 }
  0x87   :  { %1952 = vmatmul.mubr.msk.f32.vlgmr.msra.gmra.mrb[0].mxu0 %vm128_vm1, %v81_v12 }
  0x88   :  { %1970 = vmatpush3.bf16.msra.mxu0 %v2436_v62 }
  0x89   :  { %1971 = vmatprep.subr.bf16.mxu0 %v2305_v1 }
  0x8a   :  { %v112_v13 = vpop.trf.xlu0 }
  0x8b   :  { %1954 = vmatprep.mubr.msk.f32.mxu0 %vm128_vm1, %v112_v13 }
  0x8c   :  { %1972 = vmatpush3.bf16.msra.mxu0 %v2445_v63 }
  0x8d   :  { %1973 = vmatprep.subr.bf16.mxu0 %v2305_v1 }
  0x8e   :  { %v113_v14 = vpop.trf.xlu0 }
  0x8f   :  { %1955 = vmatmul.mubr.msk.f32.gmra.mrb[2].mxu0 %vm128_vm1, %v113_v14 }
  0x90   :  { %1975 = vmatprep.mubr.msk.bf16.mxu0 %vm2306_vm0, %v2305_v1  ;;  %1974 = vmatpush3.bf16.msra.mxu0 %v2454_v5 }
  0x91   :  { %1979 = vmatprep.subr.bf16.mxu0 %v2305_v1 }
  0xe5   :  { %v353_v19 = vpop.f32.mrb[0].mxu1 }
  0xe6   :  { %v354_v20 = vadd.f32 %v2410_v17, %v353_v19  ;;  %v1967_v21 = vpop.f32.mrb[1].mxu1 }
  0xe7   :  { %v356_v23 = vpop.f32.mrb[2].mxu1  ;;  %v2478_v21 = vld [vmem:[%s2889_s6] ss:$0 sm:$0xff] }
  0xe8   :  { %v1968_v24 = vpop.f32.mrb[3].mxu1  ;;  %v362_v25 = vrot.slane %v354_v20, %v2412_v18  ;;  %v369_v26 = vrot.slane %v354_v20, %v2415_v22 }
  0xea   :  { %364 = vbcast.lane.b32.xlu1 %v362_v25, 256 }
  0xee   :  { %371 = vbcast.lane.b32.xlu1 %v369_v26, 256 }
 0x15a   :  { %v1953_v27 = vpop.f32.mrb[0].mxu0 }
 0x15b   :  { %v207_v28 = vpop.f32.mrb[1].mxu0 }
 0x15c   :  { %226 = vxpose.xlu0.b32.start [1/2] (short) (narrow) %v207_v28, 8  ;;  %v365_v32 = vpop.permute.xlu1 %364 }
 0x160   :  { %227 = vxpose.xlu0.b32.end [2/2] (short) (narrow) %v1953_v27, 8  ;;  %v372_v35 = vpop.permute.xlu1 %371 }
 0x162   :  { %v1956_v29 = vpop.f32.mrb[2].mxu0 }
 0x163   :  { %v217_v30 = vpop.f32.mrb[3].mxu0 }
 0x164   :  { %258 = vxpose.xlu1.b32.start [1/2] (short) (narrow) %v217_v30, 8 }
 0x168   :  { %259 = vxpose.xlu1.b32.end [2/2] (short) (narrow) %v1956_v29, 8 }
 0x189   :  { %2142 = vset.pattern.permute.xlu0 %v2307_v8 }
 0x1dc   :  { %v2421_v33 = vpop.trf.xlu0 }
 0x1dd   :  { %v373_v34 = vadd.f32 %v365_v32, %v2421_v33 }
 0x1df   :  { %2150 = vtanh.f32 %v373_v34 }
 0x1e4   :  { %v2424_v36 = vpop.trf.xlu1 }
 0x1e5   :  { %v374_v37 = vadd.f32 %v372_v35, %v2424_v36 }
 0x1e7   :  { %2152 = vtanh.f32 %v374_v37 }
 0x1e9   :  { %v2151_v38 = vpop.eup %2150 }
 0x1ea   :  { %v377_v39 = vmul.f32 %v2151_v38, %v2419_v31 }
 0x1ec   :  { %v380_v40 = vsel %vm379_vm2, %v377_v39, 0.0 }
 0x1ed   :  { %v381_v41 = vrot.slane %v380_v40, 4 }
 0x1ef   :  { %v382_v42 = vadd.f32 %v381_v41, %v380_v40 }
 0x1f1   :  { %v2153_v43 = vpop.eup %2152  ;;  %v383_v44 = vrot.slane %v382_v42, 2 }
 0x1f2   :  { %v378_v45 = vmul.f32 %v2153_v43, %v2419_v31 }
 0x1f3   :  { %v384_v46 = vadd.f32 %v383_v44, %v382_v42 }
 0x1f4   :  { %v387_v47 = vsel %vm379_vm2, %v378_v45, 0.0 }
 0x1f5   :  { %v388_v48 = vrot.slane %v387_v47, 4  ;;  %v385_v49 = vrot.slane %v384_v46, 1 }
 0x1f7   :  { %v389_v50 = vadd.f32 %v388_v48, %v387_v47  ;;  %v386_v52 = vadd.f32 %v385_v49, %v384_v46 }
 0x1f9   :  { %v390_v51 = vrot.slane %v389_v50, 2  ;;  %v394_v55 = vmul.f32 1.442695, %v386_v52 }
 0x1fb   :  { %v391_v53 = vadd.f32 %v390_v51, %v389_v50  ;;  %2154 = vpow2.f32 %v394_v55 }
 0x1fd   :  { %v392_v54 = vrot.slane %v391_v53, 1 }
 0x1ff   :  { %v393_v56 = vadd.f32 %v392_v54, %v391_v53 }
 0x201   :  { %v396_v57 = vmul.f32 1.442695, %v393_v56 }
 0x203   :  { %2156 = vpow2.f32 %v396_v57 }
 0x205   :  { %v2155_v58 = vpop.eup %2154 }
 0x20d   :  { %v2157_v59 = vpop.eup %2156 }
 0x20e   :  { %v401_v60 = vsel %vm400_vm3, %v2157_v59, %v2155_v58 }
 0x20f   :  { %v404_v61 = vsel %vm403_vm4, %v401_v60, 0.0 }
 0x210   :  { %405 = vadd.xlane.f32.xlu0 %v404_v61 }
 0x29d   :  { %v406_v8 = vpop.xlane.xlu0 %405 }
 0x29e   :  { %2158 = vrcp.f32 %v406_v8 }
 0x2a8   :  { %v2159_v9 = vpop.eup %2158 }
 0x2a9   :  { %v409_v10 = vrot.slane %v2159_v9, 1  ;;  %v412_v11 = vmul.f32 %v2159_v9, %v2155_v58 }
 0x2ab   :  { %v413_v12 = vmul.f32 %v2157_v59, %v409_v10  ;;  %v414_v14 = vmul.f32 %v412_v11, %v2356_v0 }
 0x2ad   :  { %v415_v13 = vmul.f32 %v413_v12, %v2370_v3 }
 0x2af   :  { %v418_v15 = vrot.slane %v415_v13, 7 }
 0x2b1   :  { %v419_v16 = vsel %vm400_vm3, %v418_v15, %v414_v14 }
 0x2b2   :  { %v421_v19 = vsel %vm379_vm2, %v419_v16, 0.0 }
 0x2b3   :  { %v422_v20 = vpack.c.bf16 %v421_v19, %v421_v19 }
 0x2b5   :  { %1976 = vmatmul.mubr.msk.bf16.vlgmr.msra.gmra.mrb[4].mxu0 %vm441_vm5, %v422_v20 }
 0x2b6   :  { %1980 = vmatpush3.bf16.msra.mxu0 %v2365_v2  ;;  %1987 = vmatprep.mubr.msk.bf16.mxu0 %vm2306_vm0, %v2305_v1 }
 0x2b7   :  { %1981 = vmatprep.subr.bf16.mxu0 %v2305_v1 }
 0x2ba   :  { %1982 = vmatpush3.bf16.msra.mxu0 %v2376_v4 }
 0x2bb   :  { %1983 = vmatprep.subr.bf16.mxu0 %v2305_v1 }
 0x2be   :  { %1984 = vmatpush3.bf16.msra.mxu0 %v2387_v6 }
 0x2bf   :  { %1985 = vmatprep.subr.bf16.mxu0 %v2305_v1 }
 0x2c2   :  { %1986 = vmatpush3.bf16.msra.mxu0 %v2395_v7 }
 0x2c3   :  { %2013 = vmatprep.subr.bf16.mxu0 %v2305_v1 }
 0x388   :  { %v479_v23 = vpop.f32.mrb[4].mxu0 }
 0x389   :  { %v480_v24 = vadd.f32 %v2478_v21, %v479_v23  ;;  %v1977_v25 = vpop.f32.mrb[5].mxu0 }
 0x38a   :  { %v482_v26 = vpop.f32.mrb[6].mxu0 }
 0x38b   :  { %2160 = vtanh.f32 %v480_v24  ;;  %v1978_v27 = vpop.f32.mrb[7].mxu0  ;;  %v1849_v29 = vmul.f32 -1.442695, %v480_v24 }
 0x38d   :  { %2162 = vpow2.f32 %v1849_v29 }
 0x395   :  { %v2161_v28 = vpop.eup %2160 }
 0x396   :  { %494 = vrot.lane.b32.xlu1 %v2161_v28, %s2309_s25 }
 0x397   :  { %v2163_v30 = vpop.eup %2162 }
 0x398   :  { %v488_v32 = vadd.f32 1.0, %v2163_v30 }
 0x39a   :  { %2164 = vrcp.f32 %v488_v32 }
 0x3a4   :  { %v2165_v34 = vpop.eup %2164 }
 0x3a5   :  { %v492_v38 = vmul.f32 0.0, %v2165_v34 }
 0x408   :  { %v495_v35 = vpop.permute.xlu1 %494 }
 0x409   :  { %v497_v37 = vmul.f32 %v2165_v34, %v495_v35 }
 0x40b   :  { %499 = vrot.lane.b32.xlu0 %v497_v37, %s2310_s26  ;;  %v614_v37 = vrot.slane %v2370_v3, 1 }
 0x47d   :  { %v500_v39 = vpop.permute.xlu0 %499 }
 0x47e   :  { %v2483_v40 = vadd.f32 %v500_v39, %v492_v38 }
 0x480   :  { %2166 = vtanh.f32 %v2483_v40 }
 0x48a   :  { %v2167_v41 = vpop.eup %2166 }
 0x48b   :  { %505 = vrot.lane.b32.xlu0 %v2167_v41, %s2309_s25 }
 0x4fd   :  { %v506_v42 = vpop.permute.xlu0 %505 }
 0x4fe   :  { %v508_v43 = vmul.f32 %v2165_v34, %v506_v42  ;;  %v613_v42 = vrot.slane %v2356_v0, 1 }
 0x500   :  { %510 = vrot.lane.b32.xlu1 %v508_v43, %s2310_s26 }
 0x572   :  { %v2488_v44 = vpop.permute.xlu1 %510 }
 0x573   :  { %v514_v45 = vsel %vm513_vm6, %v2488_v44, %v2483_v40 }
 0x574   :  { %v515_v46 = vpack.c.bf16 %v514_v45, %v514_v45 }
 0x576   :  { %1988 = vmatmul.mubr.msk.bf16.vlgmr.msra.gmra.mrb[8].mxu0 %vm315_vm7, %v515_v46 }
 0x577   :  { %2014 = vmatpush3.bf16.msra.mxu0 %v2436_v62  ;;  %2019 = vmatprep.mubr.msk.bf16.mxu0 %vm2306_vm0, %v2305_v1 }
 0x578   :  { %2015 = vmatprep.subr.bf16.mxu0 %v2305_v1 }
 0x57b   :  { %2016 = vmatpush3.bf16.msra.mxu0 %v2445_v63 }
 0x57c   :  { %2017 = vmatprep.subr.bf16.mxu0 %v2305_v1 }
 0x57f   :  { %2018 = vmatpush3.bf16.msra.mxu0 %v2454_v5 }
 0x580   :  { %2023 = vmatprep.subr.bf16.mxu0 %v2305_v1 }
 0x649   :  { %v553_v47 = vpop.f32.mrb[8].mxu0 }
 0x64a   :  { %v554_v48 = vadd.f32 %v2410_v17, %v553_v47  ;;  %v1989_v49 = vpop.f32.mrb[9].mxu0 }
 0x64b   :  { %v556_v50 = vpop.f32.mrb[10].mxu0 }
 0x64c   :  { %v1990_v51 = vpop.f32.mrb[11].mxu0  ;;  %v569_v52 = vrot.slane %v554_v48, %v2415_v22  ;;  %v562_v53 = vrot.slane %v554_v48, %v2412_v18 }
 0x64e   :  { %571 = vbcast.lane.b32.xlu1 %v569_v52, 256  ;;  %564 = vbcast.lane.b32.xlu0 %v562_v53, 256 }
 0x652   :  { %624 = vrot.lane.b32.xlu1 %v508_v43, %s2311_s27 }
 0x6c0   :  { %v572_v54 = vpop.permute.xlu1 %571  ;;  %v565_v55 = vpop.permute.xlu0 %564 }
 0x6c1   :  { %v574_v56 = vadd.f32 %v572_v54, %v2424_v36  ;;  %v573_v57 = vadd.f32 %v565_v55, %v2421_v33 }
 0x6c3   :  { %2168 = vtanh.f32 %v574_v56 }
 0x6c4   :  { %2170 = vtanh.f32 %v573_v57  ;;  %v625_v47 = vpop.permute.xlu1 %624 }
 0x6cd   :  { %v2169_v58 = vpop.eup %2168 }
 0x6ce   :  { %v2171_v59 = vpop.eup %2170  ;;  %v578_v60 = vmul.f32 %v2169_v58, %v2419_v31 }
 0x6cf   :  { %v577_v61 = vmul.f32 %v2171_v59, %v2419_v31 }
 0x6d0   :  { %v586_v8 = vsel %vm379_vm2, %v578_v60, 0.0 }
 0x6d1   :  { %v587_v9 = vrot.slane %v586_v8, 4  ;;  %v579_v10 = vsel %vm379_vm2, %v577_v61, 0.0 }
 0x6d2   :  { %v580_v11 = vrot.slane %v579_v10, 4 }
 0x6d3   :  { %v588_v12 = vadd.f32 %v587_v9, %v586_v8 }
 0x6d4   :  { %v581_v13 = vadd.f32 %v580_v11, %v579_v10 }
 0x6d5   :  { %v589_v14 = vrot.slane %v588_v12, 2 }
 0x6d6   :  { %v582_v15 = vrot.slane %v581_v13, 2 }
 0x6d7   :  { %v590_v16 = vadd.f32 %v589_v14, %v588_v12 }
 0x6d8   :  { %v583_v19 = vadd.f32 %v582_v15, %v581_v13 }
 0x6d9   :  { %v591_v20 = vrot.slane %v590_v16, 1 }
 0x6da   :  { %v584_v23 = vrot.slane %v583_v19, 1 }
 0x6db   :  { %v592_v24 = vadd.f32 %v591_v20, %v590_v16 }
 0x6dc   :  { %v585_v25 = vadd.f32 %v584_v23, %v583_v19 }
 0x6dd   :  { %v595_v26 = vmul.f32 1.442695, %v592_v24 }
 0x6de   :  { %v593_v27 = vmul.f32 1.442695, %v585_v25 }
 0x6df   :  { %2172 = vpow2.f32 %v595_v26 }
 0x6e0   :  { %2174 = vpow2.f32 %v593_v27 }
 0x6e9   :  { %v2173_v28 = vpop.eup %2172 }
 0x6ea   :  { %v2175_v29 = vpop.eup %2174 }
 0x6eb   :  { %v599_v30 = vsel %vm400_vm3, %v2173_v28, %v2175_v29 }
 0x6ec   :  { %v601_v32 = vsel %vm403_vm4, %v599_v30, 0.0 }
 0x6ed   :  { %602 = vadd.xlane.f32.xlu0 %v601_v32 }
 0x77a   :  { %v603_v34 = vpop.xlane.xlu0 %602 }
 0x77b   :  { %2176 = vrcp.f32 %v603_v34 }
 0x785   :  { %v2177_v35 = vpop.eup %2176 }
 0x786   :  { %v606_v38 = vrot.slane %v2177_v35, 1  ;;  %v609_v39 = vmul.f32 %v2177_v35, %v2175_v29 }
 0x788   :  { %v610_v41 = vmul.f32 %v2173_v28, %v606_v38  ;;  %v617_v45 = vmul.f32 %v613_v42, %v609_v39 }
 0x78a   :  { %v618_v43 = vmul.f32 %v614_v37, %v610_v41 }
 0x78c   :  { %v621_v46 = vrot.slane %v618_v43, 7 }
 0x78e   :  { %v622_v48 = vsel %vm400_vm3, %v621_v46, %v617_v45 }
 0x78f   :  { %v627_v49 = vsel %vm379_vm2, %v622_v48, %v625_v47 }
 0x790   :  { %v628_v50 = vpack.c.bf16 %v627_v49, %v627_v49 }
 0x792   :  { %1998 = vmatmul.mubr.msk.bf16.vlgmr.msra.gmra.mrb[4].mxu1 %vm441_vm5, %v628_v50 }
 0x793   :  { %2002 = vmatpush3.bf16.msra.mxu1 %v2365_v2  ;;  %2009 = vmatprep.mubr.msk.bf16.mxu1 %vm2306_vm0, %v2305_v1 }
 0x794   :  { %2003 = vmatprep.subr.bf16.mxu1 %v2305_v1 }
 0x797   :  { %2004 = vmatpush3.bf16.msra.mxu1 %v2376_v4 }
 0x798   :  { %2005 = vmatprep.subr.bf16.mxu1 %v2305_v1 }
 0x79b   :  { %2006 = vmatpush3.bf16.msra.mxu1 %v2387_v6 }
 0x79c   :  { %2007 = vmatprep.subr.bf16.mxu1 %v2305_v1 }
 0x79f   :  { %2008 = vmatpush3.bf16.msra.mxu1 %v2395_v7 }
 0x7a0   :  { %2035 = vmatprep.subr.bf16.mxu1 %v2305_v1 }
 0x865   :  { %v666_v51 = vpop.f32.mrb[4].mxu1 }
 0x866   :  { %v667_v52 = vadd.f32 %v2478_v21, %v666_v51  ;;  %v1999_v53 = vpop.f32.mrb[5].mxu1 }
 0x867   :  { %v669_v54 = vpop.f32.mrb[6].mxu1 }
 0x868   :  { %2178 = vtanh.f32 %v667_v52  ;;  %v2000_v55 = vpop.f32.mrb[7].mxu1  ;;  %v1852_v57 = vmul.f32 -1.442695, %v667_v52 }
 0x86a   :  { %2180 = vpow2.f32 %v1852_v57 }
 0x872   :  { %v2179_v56 = vpop.eup %2178 }
 0x873   :  { %681 = vrot.lane.b32.xlu1 %v2179_v56, %s2309_s25 }
 0x874   :  { %v2181_v58 = vpop.eup %2180 }
 0x875   :  { %v675_v59 = vadd.f32 1.0, %v2181_v58 }
 0x877   :  { %2182 = vrcp.f32 %v675_v59 }
 0x881   :  { %v2183_v60 = vpop.eup %2182 }
 0x882   :  { %v679_v9 = vmul.f32 %v2183_v60, %v2483_v40 }
 0x8e5   :  { %v682_v61 = vpop.permute.xlu1 %681 }
 0x8e6   :  { %v684_v8 = vmul.f32 %v2183_v60, %v682_v61 }
 0x8e8   :  { %686 = vrot.lane.b32.xlu1 %v684_v8, %s2310_s26 }
 0x95a   :  { %v687_v10 = vpop.permute.xlu1 %686 }
 0x95b   :  { %v2533_v11 = vadd.f32 %v687_v10, %v679_v9  ;;  %v798_v9 = vrot.slane %v2370_v3, 2 }
 0x95d   :  { %2184 = vtanh.f32 %v2533_v11 }
 0x967   :  { %v2185_v12 = vpop.eup %2184 }
 0x968   :  { %692 = vrot.lane.b32.xlu1 %v2185_v12, %s2309_s25  ;;  %v797_v12 = vrot.slane %v2356_v0, 2 }
 0x9da   :  { %v693_v13 = vpop.permute.xlu1 %692 }
 0x9db   :  { %v2537_v14 = vmul.f32 %v2183_v60, %v693_v13 }
 0x9dd   :  { %808 = vrot.lane.b32.xlu0 %v2537_v14, %s2311_s27  ;;  %697 = vrot.lane.b32.xlu1 %v2537_v14, %s2310_s26 }
 0xa4f   :  { %v698_v15 = vpop.permute.xlu1 %697 }
 0xa50   :  { %v700_v40 = vsel %vm513_vm6, %v698_v15, %v2533_v11 }
 0xa51   :  { %v701_v16 = vpack.c.bf16 %v700_v40, %v700_v40 }
 0xa53   :  { %2010 = vmatmul.mubr.msk.bf16.vlgmr.msra.gmra.mrb[8].mxu1 %vm315_vm7, %v701_v16 }
 0xa54   :  { %2036 = vmatpush3.bf16.msra.mxu1 %v2436_v62  ;;  %2041 = vmatprep.mubr.msk.bf16.mxu1 %vm2306_vm0, %v2305_v1 }
 0xa55   :  { %2037 = vmatprep.subr.bf16.mxu1 %v2305_v1 }
 0xa58   :  { %2038 = vmatpush3.bf16.msra.mxu1 %v2445_v63 }
 0xa59   :  { %2039 = vmatprep.subr.bf16.mxu1 %v2305_v1 }
 0xa5c   :  { %2040 = vmatpush3.bf16.msra.mxu1 %v2454_v5 }
 0xa5d   :  { %2045 = vmatprep.subr.bf16.mxu1 %v2305_v1 }
 0xb26   :  { %v739_v19 = vpop.f32.mrb[8].mxu1 }
 0xb27   :  { %v740_v20 = vadd.f32 %v2410_v17, %v739_v19  ;;  %v2011_v23 = vpop.f32.mrb[9].mxu1 }
 0xb28   :  { %v742_v24 = vpop.f32.mrb[10].mxu1 }
 0xb29   :  { %v2012_v25 = vpop.f32.mrb[11].mxu1  ;;  %v748_v26 = vrot.slane %v740_v20, %v2412_v18  ;;  %v755_v27 = vrot.slane %v740_v20, %v2415_v22  ;;  %v809_v20 = vpop.permute.xlu0 %808 }
 0xb2b   :  { %750 = vbcast.lane.b32.xlu1 %v748_v26, 256 }
 0xb2f   :  { %757 = vbcast.lane.b32.xlu1 %v755_v27, 256 }
 0xb9d   :  { %v751_v28 = vpop.permute.xlu1 %750 }
 0xb9e   :  { %v759_v29 = vadd.f32 %v751_v28, %v2421_v33 }
 0xba0   :  { %2186 = vtanh.f32 %v759_v29 }
 0xba1   :  { %v758_v30 = vpop.permute.xlu1 %757 }
 0xba2   :  { %v760_v32 = vadd.f32 %v758_v30, %v2424_v36 }
 0xba4   :  { %2188 = vtanh.f32 %v760_v32 }
 0xbaa   :  { %v2187_v34 = vpop.eup %2186 }
 0xbab   :  { %v763_v35 = vmul.f32 %v2187_v34, %v2419_v31 }
 0xbad   :  { %v765_v37 = vsel %vm379_vm2, %v763_v35, 0.0 }
 0xbae   :  { %v2189_v38 = vpop.eup %2188  ;;  %v766_v39 = vrot.slane %v765_v37, 4 }
 0xbaf   :  { %v764_v41 = vmul.f32 %v2189_v38, %v2419_v31 }
 0xbb0   :  { %v767_v42 = vadd.f32 %v766_v39, %v765_v37 }
 0xbb1   :  { %v772_v43 = vsel %vm379_vm2, %v764_v41, 0.0 }
 0xbb2   :  { %v768_v45 = vrot.slane %v767_v42, 2  ;;  %v773_v46 = vrot.slane %v772_v43, 4 }
 0xbb4   :  { %v769_v47 = vadd.f32 %v768_v45, %v767_v42  ;;  %v774_v48 = vadd.f32 %v773_v46, %v772_v43 }
 0xbb6   :  { %v770_v49 = vrot.slane %v769_v47, 1  ;;  %v775_v50 = vrot.slane %v774_v48, 2 }
 0xbb8   :  { %v771_v51 = vadd.f32 %v770_v49, %v769_v47  ;;  %v776_v52 = vadd.f32 %v775_v50, %v774_v48 }
 0xbba   :  { %v777_v53 = vrot.slane %v776_v52, 1  ;;  %v779_v54 = vmul.f32 1.442695, %v771_v51 }
 0xbbc   :  { %v778_v55 = vadd.f32 %v777_v53, %v776_v52  ;;  %2190 = vpow2.f32 %v779_v54 }
 0xbbe   :  { %v781_v56 = vmul.f32 1.442695, %v778_v55 }
 0xbc0   :  { %2192 = vpow2.f32 %v781_v56 }
 0xbc6   :  { %v2191_v57 = vpop.eup %2190 }
 0xbca   :  { %v2193_v58 = vpop.eup %2192 }
 0xbcb   :  { %v785_v59 = vsel %vm400_vm3, %v2193_v58, %v2191_v57 }
 0xbcc   :  { %v787_v60 = vsel %vm403_vm4, %v785_v59, 0.0 }
 0xbcd   :  { %788 = vadd.xlane.f32.xlu1 %v787_v60 }
 0xc5a   :  { %v789_v61 = vpop.xlane.xlu1 %788 }
 0xc5b   :  { %2194 = vrcp.f32 %v789_v61 }
 0xc65   :  { %v2195_v8 = vpop.eup %2194 }
 0xc66   :  { %v792_v10 = vrot.slane %v2195_v8, 1  ;;  %v795_v13 = vmul.f32 %v2195_v8, %v2191_v57 }
 0xc68   :  { %v796_v15 = vmul.f32 %v2193_v58, %v792_v10  ;;  %v801_v16 = vmul.f32 %v797_v12, %v795_v13 }
 0xc6a   :  { %v802_v40 = vmul.f32 %v798_v9, %v796_v15 }
 0xc6c   :  { %v805_v19 = vrot.slane %v802_v40, 7 }
 0xc6e   :  { %v806_v23 = vsel %vm400_vm3, %v805_v19, %v801_v16 }
 0xc6f   :  { %v811_v24 = vsel %vm379_vm2, %v806_v23, %v809_v20 }
 0xc70   :  { %v812_v25 = vpack.c.bf16 %v811_v24, %v811_v24 }
 0xc72   :  { %2020 = vmatmul.mubr.msk.bf16.vlgmr.msra.gmra.mrb[12].mxu0 %vm441_vm5, %v812_v25 }
 0xc73   :  { %2024 = vmatpush3.bf16.msra.mxu0 %v2365_v2  ;;  %2031 = vmatprep.mubr.msk.bf16.mxu0 %vm2306_vm0, %v2305_v1 }
 0xc74   :  { %2025 = vmatprep.subr.bf16.mxu0 %v2305_v1 }
 0xc77   :  { %2026 = vmatpush3.bf16.msra.mxu0 %v2376_v4 }
 0xc78   :  { %2027 = vmatprep.subr.bf16.mxu0 %v2305_v1 }
 0xc7b   :  { %2028 = vmatpush3.bf16.msra.mxu0 %v2387_v6 }
 0xc7c   :  { %2029 = vmatprep.subr.bf16.mxu0 %v2305_v1 }
 0xc7f   :  { %2030 = vmatpush3.bf16.msra.mxu0 %v2395_v7 }
 0xc80   :  { %2057 = vmatprep.subr.bf16.mxu0 %v2305_v1 }
 0xd45   :  { %v850_v26 = vpop.f32.mrb[12].mxu0 }
 0xd46   :  { %v851_v27 = vadd.f32 %v2478_v21, %v850_v26  ;;  %v2021_v28 = vpop.f32.mrb[13].mxu0 }
 0xd47   :  { %v853_v29 = vpop.f32.mrb[14].mxu0 }
 0xd48   :  { %2196 = vtanh.f32 %v851_v27  ;;  %v2022_v30 = vpop.f32.mrb[15].mxu0  ;;  %v1855_v34 = vmul.f32 -1.442695, %v851_v27 }
 0xd4a   :  { %2198 = vpow2.f32 %v1855_v34 }
 0xd52   :  { %v2197_v32 = vpop.eup %2196 }
 0xd53   :  { %865 = vrot.lane.b32.xlu0 %v2197_v32, %s2309_s25 }
 0xd54   :  { %v2199_v35 = vpop.eup %2198 }
 0xd55   :  { %v859_v37 = vadd.f32 1.0, %v2199_v35 }
 0xd57   :  { %2200 = vrcp.f32 %v859_v37 }
 0xd61   :  { %v2201_v38 = vpop.eup %2200 }
 0xd62   :  { %v863_v42 = vmul.f32 %v2201_v38, %v2533_v11 }
 0xdc5   :  { %v866_v39 = vpop.permute.xlu0 %865 }
 0xdc6   :  { %v868_v41 = vmul.f32 %v2201_v38, %v866_v39 }
 0xdc8   :  { %870 = vrot.lane.b32.xlu0 %v868_v41, %s2310_s26 }
 0xe3a   :  { %v871_v43 = vpop.permute.xlu0 %870 }
 0xe3b   :  { %v2584_v45 = vadd.f32 %v871_v43, %v863_v42  ;;  %v982_v43 = vrot.slane %v2370_v3, 3 }
 0xe3d   :  { %2202 = vtanh.f32 %v2584_v45 }
 0xe47   :  { %v2203_v46 = vpop.eup %2202 }
 0xe48   :  { %876 = vrot.lane.b32.xlu0 %v2203_v46, %s2309_s25 }
 0xeba   :  { %v877_v47 = vpop.permute.xlu0 %876 }
 0xebb   :  { %v2588_v48 = vmul.f32 %v2201_v38, %v877_v47  ;;  %v981_v47 = vrot.slane %v2356_v0, 3 }
 0xebd   :  { %881 = vrot.lane.b32.xlu0 %v2588_v48, %s2310_s26 }
 0xf2f   :  { %v882_v49 = vpop.permute.xlu0 %881 }
 0xf30   :  { %v884_v50 = vsel %vm513_vm6, %v882_v49, %v2584_v45 }
 0xf31   :  { %v885_v51 = vpack.c.bf16 %v884_v50, %v884_v50 }
 0xf33   :  { %2032 = vmatmul.mubr.msk.bf16.vlgmr.msra.gmra.mrb[16].mxu0 %vm315_vm7, %v885_v51 }
 0xf34   :  { %2058 = vmatpush3.bf16.msra.mxu0 %v2436_v62  ;;  %2063 = vmatprep.mubr.msk.bf16.mxu0 %vm2306_vm0, %v2305_v1 }
 0xf35   :  { %2059 = vmatprep.subr.bf16.mxu0 %v2305_v1 }
 0xf38   :  { %2060 = vmatpush3.bf16.msra.mxu0 %v2445_v63 }
 0xf39   :  { %2061 = vmatprep.subr.bf16.mxu0 %v2305_v1 }
 0xf3c   :  { %2062 = vmatpush3.bf16.msra.mxu0 %v2454_v5 }
 0xf3d   :  { %2067 = vmatprep.subr.bf16.mxu0 %v2305_v1 }
0x1006   :  { %v923_v11 = vpop.f32.mrb[16].mxu0 }
0x1007   :  { %v924_v52 = vadd.f32 %v2410_v17, %v923_v11  ;;  %v2033_v53 = vpop.f32.mrb[17].mxu0 }
0x1008   :  { %v926_v54 = vpop.f32.mrb[18].mxu0 }
0x1009   :  { %v2034_v55 = vpop.f32.mrb[19].mxu0  ;;  %v939_v56 = vrot.slane %v924_v52, %v2415_v22  ;;  %v932_v57 = vrot.slane %v924_v52, %v2412_v18 }
0x100b   :  { %941 = vbcast.lane.b32.xlu0 %v939_v56, 256  ;;  %934 = vbcast.lane.b32.xlu1 %v932_v57, 256 }
0x100f   :  { %992 = vrot.lane.b32.xlu1 %v2588_v48, %s2311_s27 }
0x107d   :  { %v942_v58 = vpop.permute.xlu0 %941  ;;  %v935_v59 = vpop.permute.xlu1 %934 }
0x107e   :  { %v944_v60 = vadd.f32 %v942_v58, %v2424_v36  ;;  %v943_v61 = vadd.f32 %v935_v59, %v2421_v33 }
0x1080   :  { %2204 = vtanh.f32 %v944_v60 }
0x1081   :  { %2206 = vtanh.f32 %v943_v61  ;;  %v993_v53 = vpop.permute.xlu1 %992 }
0x108a   :  { %v2205_v8 = vpop.eup %2204 }
0x108b   :  { %v2207_v9 = vpop.eup %2206  ;;  %v948_v10 = vmul.f32 %v2205_v8, %v2419_v31 }
0x108c   :  { %v947_v12 = vmul.f32 %v2207_v9, %v2419_v31 }
0x108d   :  { %v956_v13 = vsel %vm379_vm2, %v948_v10, 0.0 }
0x108e   :  { %v957_v15 = vrot.slane %v956_v13, 4  ;;  %v949_v40 = vsel %vm379_vm2, %v947_v12, 0.0 }
0x108f   :  { %v950_v16 = vrot.slane %v949_v40, 4 }
0x1090   :  { %v958_v19 = vadd.f32 %v957_v15, %v956_v13 }
0x1091   :  { %v951_v20 = vadd.f32 %v950_v16, %v949_v40 }
0x1092   :  { %v959_v23 = vrot.slane %v958_v19, 2 }
0x1093   :  { %v952_v24 = vrot.slane %v951_v20, 2 }
0x1094   :  { %v960_v25 = vadd.f32 %v959_v23, %v958_v19 }
0x1095   :  { %v953_v26 = vadd.f32 %v952_v24, %v951_v20 }
0x1096   :  { %v961_v27 = vrot.slane %v960_v25, 1 }
0x1097   :  { %v954_v28 = vrot.slane %v953_v26, 1 }
0x1098   :  { %v962_v29 = vadd.f32 %v961_v27, %v960_v25 }
0x1099   :  { %v955_v30 = vadd.f32 %v954_v28, %v953_v26 }
0x109a   :  { %v965_v32 = vmul.f32 1.442695, %v962_v29 }
0x109b   :  { %v963_v34 = vmul.f32 1.442695, %v955_v30 }
0x109c   :  { %2208 = vpow2.f32 %v965_v32 }
0x109d   :  { %2210 = vpow2.f32 %v963_v34 }
0x10a6   :  { %v2209_v35 = vpop.eup %2208 }
0x10a7   :  { %v2211_v37 = vpop.eup %2210 }
0x10a8   :  { %v969_v38 = vsel %vm400_vm3, %v2209_v35, %v2211_v37 }
0x10a9   :  { %v971_v39 = vsel %vm403_vm4, %v969_v38, 0.0 }
0x10aa   :  { %972 = vadd.xlane.f32.xlu0 %v971_v39 }
0x1137   :  { %v973_v41 = vpop.xlane.xlu0 %972 }
0x1138   :  { %2212 = vrcp.f32 %v973_v41 }
0x1142   :  { %v2213_v42 = vpop.eup %2212 }
0x1143   :  { %v976_v46 = vrot.slane %v2213_v42, 1  ;;  %v979_v49 = vmul.f32 %v2213_v42, %v2211_v37 }
0x1145   :  { %v980_v50 = vmul.f32 %v2209_v35, %v976_v46  ;;  %v985_v11 = vmul.f32 %v981_v47, %v979_v49 }
0x1147   :  { %v986_v51 = vmul.f32 %v982_v43, %v980_v50 }
0x1149   :  { %v989_v52 = vrot.slane %v986_v51, 7 }
0x114b   :  { %v990_v54 = vsel %vm400_vm3, %v989_v52, %v985_v11 }
0x114c   :  { %v995_v55 = vsel %vm379_vm2, %v990_v54, %v993_v53 }
0x114d   :  { %v996_v56 = vpack.c.bf16 %v995_v55, %v995_v55 }
0x114f   :  { %2042 = vmatmul.mubr.msk.bf16.vlgmr.msra.gmra.mrb[12].mxu1 %vm441_vm5, %v996_v56 }
0x1150   :  { %2046 = vmatpush3.bf16.msra.mxu1 %v2365_v2  ;;  %2053 = vmatprep.mubr.msk.bf16.mxu1 %vm2306_vm0, %v2305_v1 }
0x1151   :  { %2047 = vmatprep.subr.bf16.mxu1 %v2305_v1 }
0x1154   :  { %2048 = vmatpush3.bf16.msra.mxu1 %v2376_v4 }
0x1155   :  { %2049 = vmatprep.subr.bf16.mxu1 %v2305_v1 }
0x1158   :  { %2050 = vmatpush3.bf16.msra.mxu1 %v2387_v6 }
0x1159   :  { %2051 = vmatprep.subr.bf16.mxu1 %v2305_v1 }
0x115c   :  { %2052 = vmatpush3.bf16.msra.mxu1 %v2395_v7 }
0x115d   :  { %2079 = vmatprep.subr.bf16.mxu1 %v2305_v1 }
0x1222   :  { %v1034_v0 = vpop.f32.mrb[12].mxu1 }
0x1223   :  { %v1035_v2 = vadd.f32 %v2478_v21, %v1034_v0  ;;  %v2043_v3 = vpop.f32.mrb[13].mxu1 }
0x1224   :  { %v1037_v57 = vpop.f32.mrb[14].mxu1 }
0x1225   :  { %2214 = vtanh.f32 %v1035_v2  ;;  %v2044_v58 = vpop.f32.mrb[15].mxu1  ;;  %v1858_v4 = vmul.f32 -1.442695, %v1035_v2 }
0x1227   :  { %2216 = vpow2.f32 %v1858_v4 }
0x122f   :  { %v2215_v59 = vpop.eup %2214 }
0x1230   :  { %1049 = vrot.lane.b32.xlu1 %v2215_v59, %s2309_s25 }
0x1231   :  { %v2217_v60 = vpop.eup %2216 }
0x1232   :  { %v1043_v6 = vadd.f32 1.0, %v2217_v60  ;;  %v2670_v60 = vld [vmem:[%s2883_s0 + $0x8] sm:$0xff] }
0x1234   :  { %2218 = vrcp.f32 %v1043_v6  ;;  %v1166_v6 = vrot.slane %v2670_v60, 4 }
0x123e   :  { %v2219_v61 = vpop.eup %2218 }
0x123f   :  { %v1047_v9 = vmul.f32 %v2219_v61, %v2584_v45 }
0x12a2   :  { %v1050_v8 = vpop.permute.xlu1 %1049 }
0x12a3   :  { %v1052_v7 = vmul.f32 %v2219_v61, %v1050_v8  ;;  %v2676_v8 = vld [vmem:[%s2883_s0] sm:$0xff] }
0x12a5   :  { %1054 = vrot.lane.b32.xlu1 %v1052_v7, %s2310_s26  ;;  %v1165_v7 = vrot.slane %v2676_v8, 4 }
0x1317   :  { %v1055_v10 = vpop.permute.xlu1 %1054 }
0x1318   :  { %v2635_v12 = vadd.f32 %v1055_v10, %v1047_v9 }
0x131a   :  { %2220 = vtanh.f32 %v2635_v12 }
0x1324   :  { %v2221_v13 = vpop.eup %2220 }
0x1325   :  { %1060 = vrot.lane.b32.xlu1 %v2221_v13, %s2309_s25 }
0x1397   :  { %v1061_v15 = vpop.permute.xlu1 %1060 }
0x1398   :  { %v2639_v40 = vmul.f32 %v2219_v61, %v1061_v15 }
0x139a   :  { %1065 = vrot.lane.b32.xlu1 %v2639_v40, %s2310_s26 }
0x140c   :  { %v1066_v16 = vpop.permute.xlu1 %1065 }
0x140d   :  { %v1068_v19 = vsel %vm513_vm6, %v1066_v16, %v2635_v12 }
0x140e   :  { %v1069_v20 = vpack.c.bf16 %v1068_v19, %v1068_v19 }
0x1410   :  { %2054 = vmatmul.mubr.msk.bf16.vlgmr.msra.gmra.mrb[16].mxu1 %vm315_vm7, %v1069_v20 }
0x1411   :  { %2080 = vmatpush3.bf16.msra.mxu1 %v2436_v62  ;;  %2085 = vmatprep.mubr.msk.bf16.mxu1 %vm2306_vm0, %v2305_v1 }
0x1412   :  { %2081 = vmatprep.subr.bf16.mxu1 %v2305_v1 }
0x1415   :  { %2082 = vmatpush3.bf16.msra.mxu1 %v2445_v63 }
0x1416   :  { %2083 = vmatprep.subr.bf16.mxu1 %v2305_v1 }
0x1419   :  { %2084 = vmatpush3.bf16.msra.mxu1 %v2454_v5 }
0x141a   :  { %2089 = vmatprep.subr.bf16.mxu1 %v2305_v1 }
0x14e3   :  { %v1107_v45 = vpop.f32.mrb[16].mxu1 }
0x14e4   :  { %v1108_v23 = vadd.f32 %v2410_v17, %v1107_v45  ;;  %v2055_v24 = vpop.f32.mrb[17].mxu1 }
0x14e5   :  { %v1110_v25 = vpop.f32.mrb[18].mxu1  ;;  %v2685_v24 = vld [vmem:[%s2884_s1] sm:$0xff]  }
0x14e6   :  { %v2056_v26 = vpop.f32.mrb[19].mxu1  ;;  %v1123_v27 = vrot.slane %v1108_v23, %v2415_v22  ;;  %v1116_v28 = vrot.slane %v1108_v23, %v2412_v18  ;;  %v2694_v25 = vld [vmem:[%s2884_s1 + $0x8] sm:$0xff]  }
0x14e7   :  { %v2701_v26 = vld [vmem:[%s2884_s1 + $0x10] sm:$0xff]  }
0x14e8   :  { %1125 = vbcast.lane.b32.xlu0 %v1123_v27, 256  ;;  %1118 = vbcast.lane.b32.xlu1 %v1116_v28, 256  ;;  %v2708_v27 = vld [vmem:[%s2884_s1 + $0x18] sm:$0xff]  }
0x14ec   :  { %1176 = vrot.lane.b32.xlu0 %v2639_v40, %s2311_s27 }
0x155a   :  { %v1126_v29 = vpop.permute.xlu0 %1125  ;;  %v1119_v30 = vpop.permute.xlu1 %1118 }
0x155b   :  { %v1128_v32 = vadd.f32 %v1126_v29, %v2424_v36  ;;  %v1127_v34 = vadd.f32 %v1119_v30, %v2421_v33 }
0x155d   :  { %2222 = vtanh.f32 %v1128_v32 }
0x155e   :  { %2224 = vtanh.f32 %v1127_v34  ;;  %v1177_v19 = vpop.permute.xlu0 %1176 }
0x1567   :  { %v2223_v17 = vpop.eup %2222 }
0x1568   :  { %v2225_v35 = vpop.eup %2224  ;;  %v1132_v37 = vmul.f32 %v2223_v17, %v2419_v31 }
0x1569   :  { %v1131_v38 = vmul.f32 %v2225_v35, %v2419_v31 }
0x156a   :  { %v1140_v39 = vsel %vm379_vm2, %v1132_v37, 0.0 }
0x156b   :  { %v1141_v41 = vrot.slane %v1140_v39, 4  ;;  %v1133_v42 = vsel %vm379_vm2, %v1131_v38, 0.0 }
0x156c   :  { %v1134_v43 = vrot.slane %v1133_v42, 4 }
0x156d   :  { %v1142_v46 = vadd.f32 %v1141_v41, %v1140_v39 }
0x156e   :  { %v1135_v47 = vadd.f32 %v1134_v43, %v1133_v42 }
0x156f   :  { %v1143_v49 = vrot.slane %v1142_v46, 2 }
0x1570   :  { %v1136_v50 = vrot.slane %v1135_v47, 2 }
0x1571   :  { %v1144_v51 = vadd.f32 %v1143_v49, %v1142_v46 }
0x1572   :  { %v1137_v11 = vadd.f32 %v1136_v50, %v1135_v47 }
0x1573   :  { %v1145_v52 = vrot.slane %v1144_v51, 1 }
0x1574   :  { %v1138_v53 = vrot.slane %v1137_v11, 1 }
0x1575   :  { %v1146_v54 = vadd.f32 %v1145_v52, %v1144_v51 }
0x1576   :  { %v1139_v55 = vadd.f32 %v1138_v53, %v1137_v11  ;;  %v2738_v53 = vld [vmem:[%s2887_s2] ss:$0 sm:$0xff] }
0x1577   :  { %v1149_v56 = vmul.f32 1.442695, %v1146_v54 }
0x1578   :  { %v1147_v0 = vmul.f32 1.442695, %v1139_v55 }
0x1579   :  { %2226 = vpow2.f32 %v1149_v56 }
0x157a   :  { %2228 = vpow2.f32 %v1147_v0 }
0x1583   :  { %v2227_v2 = vpop.eup %2226 }
0x1584   :  { %v2229_v3 = vpop.eup %2228 }
0x1585   :  { %v1153_v57 = vsel %vm400_vm3, %v2227_v2, %v2229_v3 }
0x1586   :  { %v1155_v58 = vsel %vm403_vm4, %v1153_v57, 0.0 }
0x1587   :  { %1156 = vadd.xlane.f32.xlu1 %v1155_v58 }
0x1614   :  { %v1157_v59 = vpop.xlane.xlu1 %1156 }
0x1615   :  { %2230 = vrcp.f32 %v1157_v59 }
0x161f   :  { %v2231_v4 = vpop.eup %2230 }
0x1620   :  { %v1160_v61 = vrot.slane %v2231_v4, 1  ;;  %v1163_v9 = vmul.f32 %v2231_v4, %v2229_v3 }
0x1622   :  { %v1164_v10 = vmul.f32 %v2227_v2, %v1160_v61  ;;  %v1169_v15 = vmul.f32 %v1165_v7, %v1163_v9 }
0x1624   :  { %v1170_v13 = vmul.f32 %v1166_v6, %v1164_v10 }
0x1626   :  { %v1173_v16 = vrot.slane %v1170_v13, 7 }
0x1628   :  { %v1174_v20 = vsel %vm400_vm3, %v1173_v16, %v1169_v15 }
0x1629   :  { %v1179_v45 = vsel %vm379_vm2, %v1174_v20, %v1177_v19 }
0x162a   :  { %v1180_v23 = vpack.c.bf16 %v1179_v45, %v1179_v45 }
0x162c   :  { %2064 = vmatmul.mubr.msk.bf16.vlgmr.msra.gmra.mrb[20].mxu0 %vm441_vm5, %v1180_v23 }
0x162d   :  { %2068 = vmatpush3.bf16.msra.mxu0 %v2685_v24  ;;  %2075 = vmatprep.mubr.msk.bf16.mxu0 %vm2306_vm0, %v2305_v1 }
0x162e   :  { %2069 = vmatprep.subr.bf16.mxu0 %v2305_v1 }
0x1631   :  { %2070 = vmatpush3.bf16.msra.mxu0 %v2694_v25 }
0x1632   :  { %2071 = vmatprep.subr.bf16.mxu0 %v2305_v1 }
0x1635   :  { %2072 = vmatpush3.bf16.msra.mxu0 %v2701_v26 }
0x1636   :  { %2073 = vmatprep.subr.bf16.mxu0 %v2305_v1 }
0x1639   :  { %2074 = vmatpush3.bf16.msra.mxu0 %v2708_v27 }
0x163a   :  { %2101 = vmatprep.subr.bf16.mxu0 %v2305_v1 }
0x16ff   :  { %v1218_v28 = vpop.f32.mrb[20].mxu0 }
0x1700   :  { %v1219_v29 = vadd.f32 %v2478_v21, %v1218_v28  ;;  %v2065_v30 = vpop.f32.mrb[21].mxu0 }
0x1701   :  { %v1221_v32 = vpop.f32.mrb[22].mxu0 }
0x1702   :  { %2232 = vtanh.f32 %v1219_v29  ;;  %v2066_v34 = vpop.f32.mrb[23].mxu0  ;;  %v1861_v35 = vmul.f32 -1.442695, %v1219_v29 }
0x1704   :  { %2234 = vpow2.f32 %v1861_v35 }
0x170c   :  { %v2233_v17 = vpop.eup %2232 }
0x170d   :  { %1233 = vrot.lane.b32.xlu0 %v2233_v17, %s2309_s25 }
0x170e   :  { %v2235_v37 = vpop.eup %2234 }
0x170f   :  { %v1227_v38 = vadd.f32 1.0, %v2235_v37 }
0x1711   :  { %2236 = vrcp.f32 %v1227_v38 }
0x171b   :  { %v2237_v39 = vpop.eup %2236 }
0x171c   :  { %v1231_v43 = vmul.f32 %v2237_v39, %v2635_v12 }
0x177f   :  { %v1234_v41 = vpop.permute.xlu0 %1233 }
0x1780   :  { %v1236_v42 = vmul.f32 %v2237_v39, %v1234_v41 }
0x1782   :  { %1238 = vrot.lane.b32.xlu0 %v1236_v42, %s2310_s26  ;;  %v1350_v42 = vrot.slane %v2670_v60, 5 }
0x17f4   :  { %v1239_v21 = vpop.permute.xlu0 %1238 }
0x17f5   :  { %v2716_v46 = vadd.f32 %v1239_v21, %v1231_v43  ;;  %v1349_v21 = vrot.slane %v2676_v8, 5 }
0x17f7   :  { %2238 = vtanh.f32 %v2716_v46 }
0x1801   :  { %v2239_v47 = vpop.eup %2238 }
0x1802   :  { %1244 = vrot.lane.b32.xlu0 %v2239_v47, %s2309_s25 }
0x1874   :  { %v1245_v49 = vpop.permute.xlu0 %1244 }
0x1875   :  { %v1247_v50 = vmul.f32 %v2237_v39, %v1245_v49 }
0x1877   :  { %1249 = vrot.lane.b32.xlu0 %v1247_v50, %s2310_s26 }
0x18e9   :  { %v2721_v51 = vpop.permute.xlu0 %1249 }
0x18ea   :  { %v1252_v11 = vsel %vm513_vm6, %v2721_v51, %v2716_v46 }
0x18eb   :  { %v1253_v52 = vpack.c.bf16 %v1252_v11, %v1252_v11 }
0x18ed   :  { %2076 = vmatmul.mubr.msk.bf16.vlgmr.msra.gmra.mrb[24].mxu0 %vm315_vm7, %v1253_v52 }
0x18ee   :  { %2102 = vmatpush3.bf16.msra.mxu0 %v2436_v62  ;;  %2107 = vmatprep.mubr.msk.bf16.mxu0 %vm2306_vm0, %v2305_v1 }
0x18ef   :  { %2103 = vmatprep.subr.bf16.mxu0 %v2305_v1 }
0x18f2   :  { %2104 = vmatpush3.bf16.msra.mxu0 %v2445_v63 }
0x18f3   :  { %2105 = vmatprep.subr.bf16.mxu0 %v2305_v1 }
0x18f6   :  { %2106 = vmatpush3.bf16.msra.mxu0 %v2454_v5 }
0x18f7   :  { %2111 = vmatprep.subr.bf16.mxu0 %v2305_v1 }
0x19c0   :  { %v1291_v12 = vpop.f32.mrb[24].mxu0 }
0x19c1   :  { %v1292_v62 = vadd.f32 %v2738_v53, %v1291_v12  ;;  %v2077_v54 = vpop.f32.mrb[25].mxu0 }
0x19c2   :  { %v1294_v55 = vpop.f32.mrb[26].mxu0 }
0x19c3   :  { %v2078_v56 = vpop.f32.mrb[27].mxu0  ;;  %v1307_v0 = vrot.slane %v1292_v62, %v2415_v22  ;;  %v1300_v63 = vrot.slane %v1292_v62, %v2412_v18 }
0x19c5   :  { %1309 = vbcast.lane.b32.xlu0 %v1307_v0, 256  ;;  %1302 = vbcast.lane.b32.xlu1 %v1300_v63, 256  ;;  %v2770_v0 = vld [vmem:[%s2889_s6] ss:$0 sm:$0xff] }
0x19c9   :  { %1360 = vrot.lane.b32.xlu1 %v1247_v50, %s2311_s27 }
0x1a37   :  { %v1310_v5 = vpop.permute.xlu0 %1309  ;;  %v1303_v2 = vpop.permute.xlu1 %1302 }
0x1a38   :  { %v1312_v3 = vadd.f32 %v1310_v5, %v2424_v36  ;;  %v1311_v57 = vadd.f32 %v1303_v2, %v2421_v33 }
0x1a3a   :  { %2240 = vtanh.f32 %v1312_v3 }
0x1a3b   :  { %2242 = vtanh.f32 %v1311_v57  ;;  %v1361_v12 = vpop.permute.xlu1 %1360 }
0x1a44   :  { %v2241_v58 = vpop.eup %2240 }
0x1a45   :  { %v2243_v59 = vpop.eup %2242  ;;  %v1316_v4 = vmul.f32 %v2241_v58, %v2419_v31 }
0x1a46   :  { %v1315_v6 = vmul.f32 %v2243_v59, %v2419_v31 }
0x1a47   :  { %v1324_v61 = vsel %vm379_vm2, %v1316_v4, 0.0 }
0x1a48   :  { %v1325_v7 = vrot.slane %v1324_v61, 4  ;;  %v1317_v9 = vsel %vm379_vm2, %v1315_v6, 0.0 }
0x1a49   :  { %v1318_v10 = vrot.slane %v1317_v9, 4 }
0x1a4a   :  { %v1326_v13 = vadd.f32 %v1325_v7, %v1324_v61 }
0x1a4b   :  { %v1319_v15 = vadd.f32 %v1318_v10, %v1317_v9 }
0x1a4c   :  { %v1327_v16 = vrot.slane %v1326_v13, 2 }
0x1a4d   :  { %v1320_v19 = vrot.slane %v1319_v15, 2 }
0x1a4e   :  { %v1328_v20 = vadd.f32 %v1327_v16, %v1326_v13 }
0x1a4f   :  { %v1321_v45 = vadd.f32 %v1320_v19, %v1319_v15 }
0x1a50   :  { %v1329_v23 = vrot.slane %v1328_v20, 1 }
0x1a51   :  { %v1322_v28 = vrot.slane %v1321_v45, 1 }
0x1a52   :  { %v1330_v29 = vadd.f32 %v1329_v23, %v1328_v20 }
0x1a53   :  { %v1323_v30 = vadd.f32 %v1322_v28, %v1321_v45  ;;  %v2303_v28 = vld [vmem:[%s2888_s5 + $0x8] sm:$0xff]  }
0x1a54   :  { %v1333_v32 = vmul.f32 1.442695, %v1330_v29  ;;  %v2304_v29 = vld [vmem:[%s2888_s5 + $0x10] sm:$0xff]  }
0x1a55   :  { %v1331_v34 = vmul.f32 1.442695, %v1323_v30 }
0x1a56   :  { %2244 = vpow2.f32 %v1333_v32 }
0x1a57   :  { %2246 = vpow2.f32 %v1331_v34 }
0x1a60   :  { %v2245_v17 = vpop.eup %2244 }
0x1a61   :  { %v2247_v35 = vpop.eup %2246 }
0x1a62   :  { %v1337_v37 = vsel %vm400_vm3, %v2245_v17, %v2247_v35 }
0x1a63   :  { %v1339_v38 = vsel %vm403_vm4, %v1337_v37, 0.0 }
0x1a64   :  { %1340 = vadd.xlane.f32.xlu0 %v1339_v38 }
0x1af1   :  { %v1341_v39 = vpop.xlane.xlu0 %1340 }
0x1af2   :  { %2248 = vrcp.f32 %v1341_v39 }
0x1afc   :  { %v2249_v41 = vpop.eup %2248 }
0x1afd   :  { %v1344_v43 = vrot.slane %v2249_v41, 1  ;;  %v1347_v47 = vmul.f32 %v2249_v41, %v2247_v35 }
0x1aff   :  { %v1348_v49 = vmul.f32 %v2245_v17, %v1344_v43  ;;  %v1353_v11 = vmul.f32 %v1349_v21, %v1347_v47 }
0x1b01   :  { %v1354_v50 = vmul.f32 %v1350_v42, %v1348_v49 }
0x1b03   :  { %v1357_v52 = vrot.slane %v1354_v50, 7 }
0x1b05   :  { %v1358_v62 = vsel %vm400_vm3, %v1357_v52, %v1353_v11 }
0x1b06   :  { %v1363_v54 = vsel %vm379_vm2, %v1358_v62, %v1361_v12 }
0x1b07   :  { %v1364_v55 = vpack.c.bf16 %v1363_v54, %v1363_v54 }
0x1b09   :  { %2086 = vmatmul.mubr.msk.bf16.vlgmr.msra.gmra.mrb[20].mxu1 %vm441_vm5, %v1364_v55 }
0x1b0a   :  { %2090 = vmatpush3.bf16.msra.mxu1 %v2685_v24  ;;  %2097 = vmatprep.mubr.msk.bf16.mxu1 %vm2306_vm0, %v2305_v1 }
0x1b0b   :  { %2091 = vmatprep.subr.bf16.mxu1 %v2305_v1 }
0x1b0e   :  { %2092 = vmatpush3.bf16.msra.mxu1 %v2694_v25 }
0x1b0f   :  { %2093 = vmatprep.subr.bf16.mxu1 %v2305_v1 }
0x1b12   :  { %2094 = vmatpush3.bf16.msra.mxu1 %v2701_v26 }
0x1b13   :  { %2095 = vmatprep.subr.bf16.mxu1 %v2305_v1 }
0x1b16   :  { %2096 = vmatpush3.bf16.msra.mxu1 %v2708_v27 }
0x1b17   :  { %2123 = vmatprep.subr.bf16.mxu1 %v2305_v1 }
0x1bdc   :  { %v1402_v56 = vpop.f32.mrb[20].mxu1 }
0x1bdd   :  { %v1403_v63 = vadd.f32 %v2770_v0, %v1402_v56  ;;  %v2087_v5 = vpop.f32.mrb[21].mxu1 }
0x1bde   :  { %v1405_v2 = vpop.f32.mrb[22].mxu1 }
0x1bdf   :  { %2250 = vtanh.f32 %v1403_v63  ;;  %v2088_v3 = vpop.f32.mrb[23].mxu1  ;;  %v1864_v58 = vmul.f32 -1.442695, %v1403_v63 }
0x1be1   :  { %2252 = vpow2.f32 %v1864_v58 }
0x1be9   :  { %v2251_v57 = vpop.eup %2250 }
0x1bea   :  { %1417 = vrot.lane.b32.xlu1 %v2251_v57, %s2309_s25 }
0x1beb   :  { %v2253_v59 = vpop.eup %2252 }
0x1bec   :  { %v1411_v4 = vadd.f32 1.0, %v2253_v59 }
0x1bee   :  { %2254 = vrcp.f32 %v1411_v4 }
0x1bf8   :  { %v2255_v6 = vpop.eup %2254 }
0x1bf9   :  { %v1415_v9 = vmul.f32 %v2255_v6, %v2716_v46  ;;  %v2302_v46 = vld [vmem:[%s2888_s5] sm:$0xff]   ;;  %s2312_s5 = smov 96  }
0x1c5c   :  { %v1418_v61 = vpop.permute.xlu1 %1417 }
0x1c5d   :  { %v1420_v7 = vmul.f32 %v2255_v6, %v1418_v61 }
0x1c5f   :  { %1422 = vrot.lane.b32.xlu1 %v1420_v7, %s2310_s26 }
0x1cd1   :  { %v1423_v10 = vpop.permute.xlu1 %1422 }
0x1cd2   :  { %v2776_v13 = vadd.f32 %v1423_v10, %v1415_v9 }
0x1cd4   :  { %2256 = vtanh.f32 %v2776_v13 }
0x1cde   :  { %v2257_v15 = vpop.eup %2256 }
0x1cdf   :  { %1428 = vrot.lane.b32.xlu1 %v2257_v15, %s2309_s25 }
0x1d51   :  { %v1429_v16 = vpop.permute.xlu1 %1428 }
0x1d52   :  { %v2780_v19 = vmul.f32 %v2255_v6, %v1429_v16 }
0x1d54   :  { %1433 = vrot.lane.b32.xlu1 %v2780_v19, %s2310_s26 }
0x1dc6   :  { %v1434_v20 = vpop.permute.xlu1 %1433 }
0x1dc7   :  { %v1436_v45 = vsel %vm513_vm6, %v1434_v20, %v2776_v13  ;;  %v1534_v20 = vrot.slane %v2670_v60, 6 }
0x1dc8   :  { %v1437_v23 = vpack.c.bf16 %v1436_v45, %v1436_v45 }
0x1dca   :  { %2098 = vmatmul.mubr.msk.bf16.vlgmr.msra.gmra.mrb[24].mxu1 %vm315_vm7, %v1437_v23  ;;  %v1533_v23 = vrot.slane %v2676_v8, 6 }
0x1dcb   :  { %2124 = vmatpush3.bf16.msra.mxu1 %v2302_v46  ;;  %2129 = vmatprep.mubr.msk.bf16.mxu1 %vm2306_vm0, %v2305_v1 }
0x1dcc   :  { %2125 = vmatprep.subr.bf16.mxu1 %v2305_v1 }
0x1dcf   :  { %2126 = vmatpush3.bf16.msra.mxu1 %v2303_v28 }
0x1dd0   :  { %2127 = vmatprep.subr.bf16.mxu1 %v2305_v1 }
0x1dd3   :  { %2128 = vmatpush3.bf16.msra.mxu1 %v2304_v29 }
0x1e9d   :  { %v1475_v30 = vpop.f32.mrb[24].mxu1 }
0x1e9e   :  { %v1476_v32 = vadd.f32 %v2738_v53, %v1475_v30  ;;  %v2099_v34 = vpop.f32.mrb[25].mxu1 }
0x1e9f   :  { %v1478_v17 = vpop.f32.mrb[26].mxu1 }
0x1ea0   :  { %v2100_v35 = vpop.f32.mrb[27].mxu1  ;;  %v1491_v37 = vrot.slane %v1476_v32, %v2415_v22  ;;  %v1484_v38 = vrot.slane %v1476_v32, %v2412_v18 }
0x1ea2   :  { %1493 = vbcast.lane.b32.xlu0 %v1491_v37, 256  ;;  %1486 = vbcast.lane.b32.xlu1 %v1484_v38, 256 }
0x1ea6   :  { %1544 = vrot.lane.b32.xlu0 %v2780_v19, %s2311_s27 }
0x1f14   :  { %v1494_v39 = vpop.permute.xlu0 %1493  ;;  %v1487_v41 = vpop.permute.xlu1 %1486 }
0x1f15   :  { %v1496_v42 = vadd.f32 %v1494_v39, %v2424_v36  ;;  %v1495_v43 = vadd.f32 %v1487_v41, %v2421_v33 }
0x1f17   :  { %2258 = vtanh.f32 %v1496_v42 }
0x1f18   :  { %2260 = vtanh.f32 %v1495_v43  ;;  %v1545_v34 = vpop.permute.xlu0 %1544 }
0x1f21   :  { %v2259_v21 = vpop.eup %2258 }
0x1f22   :  { %v2261_v47 = vpop.eup %2260  ;;  %v1500_v49 = vmul.f32 %v2259_v21, %v2419_v31 }
0x1f23   :  { %v1499_v50 = vmul.f32 %v2261_v47, %v2419_v31 }
0x1f24   :  { %v1508_v11 = vsel %vm379_vm2, %v1500_v49, 0.0 }
0x1f25   :  { %v1509_v52 = vrot.slane %v1508_v11, 4  ;;  %v1501_v12 = vsel %vm379_vm2, %v1499_v50, 0.0 }
0x1f26   :  { %v1502_v62 = vrot.slane %v1501_v12, 4 }
0x1f27   :  { %v1510_v54 = vadd.f32 %v1509_v52, %v1508_v11 }
0x1f28   :  { %v1503_v55 = vadd.f32 %v1502_v62, %v1501_v12 }
0x1f29   :  { %v1511_v56 = vrot.slane %v1510_v54, 2 }
0x1f2a   :  { %v1504_v63 = vrot.slane %v1503_v55, 2 }
0x1f2b   :  { %v1512_v5 = vadd.f32 %v1511_v56, %v1510_v54 }
0x1f2c   :  { %v1505_v2 = vadd.f32 %v1504_v63, %v1503_v55 }
0x1f2d   :  { %v1513_v3 = vrot.slane %v1512_v5, 1 }
0x1f2e   :  { %v1506_v57 = vrot.slane %v1505_v2, 1 }
0x1f2f   :  { %v1514_v58 = vadd.f32 %v1513_v3, %v1512_v5 }
0x1f30   :  { %v1507_v59 = vadd.f32 %v1506_v57, %v1505_v2 }
0x1f31   :  { %v1517_v4 = vmul.f32 1.442695, %v1514_v58 }
0x1f32   :  { %v1515_v6 = vmul.f32 1.442695, %v1507_v59 }
0x1f33   :  { %2262 = vpow2.f32 %v1517_v4 }
0x1f34   :  { %2264 = vpow2.f32 %v1515_v6 }
0x1f3d   :  { %v2263_v61 = vpop.eup %2262 }
0x1f3e   :  { %v2265_v7 = vpop.eup %2264 }
0x1f3f   :  { %v1521_v9 = vsel %vm400_vm3, %v2263_v61, %v2265_v7 }
0x1f40   :  { %v1523_v10 = vsel %vm403_vm4, %v1521_v9, 0.0 }
0x1f41   :  { %1524 = vadd.xlane.f32.xlu1 %v1523_v10 }
0x1fce   :  { %v1525_v15 = vpop.xlane.xlu1 %1524 }
0x1fcf   :  { %2266 = vrcp.f32 %v1525_v15 }
0x1fd9   :  { %v2267_v16 = vpop.eup %2266 }
0x1fda   :  { %v1528_v45 = vrot.slane %v2267_v16, 1  ;;  %v1531_v46 = vmul.f32 %v2267_v16, %v2265_v7 }
0x1fdc   :  { %v1532_v28 = vmul.f32 %v2263_v61, %v1528_v45  ;;  %v1537_v30 = vmul.f32 %v1533_v23, %v1531_v46 }
0x1fde   :  { %v1538_v29 = vmul.f32 %v1534_v20, %v1532_v28 }
0x1fe0   :  { %v1541_v32 = vrot.slane %v1538_v29, 7 }
0x1fe2   :  { %v1542_v17 = vsel %vm400_vm3, %v1541_v32, %v1537_v30 }
0x1fe3   :  { %v1547_v35 = vsel %vm379_vm2, %v1542_v17, %v1545_v34 }
0x1fe4   :  { %v1548_v37 = vpack.c.bf16 %v1547_v35, %v1547_v35 }
0x1fe6   :  { %2108 = vmatmul.mubr.msk.bf16.vlgmr.msra.gmra.mrb[28].mxu0 %vm441_vm5, %v1548_v37 }
0x1fe7   :  { %2112 = vmatpush3.bf16.msra.mxu0 %v2685_v24  ;;  %2119 = vmatprep.mubr.msk.bf16.mxu0 %vm2306_vm0, %v2305_v1 }
0x1fe8   :  { %2113 = vmatprep.subr.bf16.mxu0 %v2305_v1 }
0x1feb   :  { %2114 = vmatpush3.bf16.msra.mxu0 %v2694_v25 }
0x1fec   :  { %2115 = vmatprep.subr.bf16.mxu0 %v2305_v1 }
0x1fef   :  { %2116 = vmatpush3.bf16.msra.mxu0 %v2701_v26 }
0x1ff0   :  { %2117 = vmatprep.subr.bf16.mxu0 %v2305_v1 }
0x1ff3   :  { %2118 = vmatpush3.bf16.msra.mxu0 %v2708_v27 }
0x20b9   :  { %v1586_v38 = vpop.f32.mrb[28].mxu0 }
0x20ba   :  { %v1587_v39 = vadd.f32 %v2770_v0, %v1586_v38  ;;  %v2109_v41 = vpop.f32.mrb[29].mxu0 }
0x20bb   :  { %v1589_v24 = vpop.f32.mrb[30].mxu0 }
0x20bc   :  { %2268 = vtanh.f32 %v1587_v39  ;;  %v2110_v42 = vpop.f32.mrb[31].mxu0  ;;  %v1867_v21 = vmul.f32 -1.442695, %v1587_v39  ;;  %v1718_v24 = vrot.slane %v2670_v60, 7 }
0x20be   :  { %2270 = vpow2.f32 %v1867_v21 }
0x20c6   :  { %v2269_v43 = vpop.eup %2268 }
0x20c7   :  { %1601 = vrot.lane.b32.xlu0 %v2269_v43, %s2309_s25  ;;  %v1717_v43 = vrot.slane %v2676_v8, 7 }
0x20c8   :  { %v2271_v25 = vpop.eup %2270 }
0x20c9   :  { %v1595_v47 = vadd.f32 1.0, %v2271_v25 }
0x20cb   :  { %2272 = vrcp.f32 %v1595_v47 }
0x20d5   :  { %v2273_v26 = vpop.eup %2272 }
0x20d6   :  { %v1599_v27 = vmul.f32 %v2273_v26, %v2776_v13 }
0x2139   :  { %v1602_v49 = vpop.permute.xlu0 %1601 }
0x213a   :  { %v1604_v1 = vmul.f32 %v2273_v26, %v1602_v49 }
0x213c   :  { %1606 = vrot.lane.b32.xlu0 %v1604_v1, %s2310_s26 }
0x21ae   :  { %v1607_v50 = vpop.permute.xlu0 %1606 }
0x21af   :  { %v2831_v11 = vadd.f32 %v1607_v50, %v1599_v27 }
0x21b1   :  { %2274 = vtanh.f32 %v2831_v11 }
0x21bb   :  { %v2275_v52 = vpop.eup %2274 }
0x21bc   :  { %1612 = vrot.lane.b32.xlu0 %v2275_v52, %s2309_s25 }
0x222e   :  { %v1613_v12 = vpop.permute.xlu0 %1612 }
0x222f   :  { %v2835_v62 = vmul.f32 %v2273_v26, %v1613_v12 }
0x2231   :  { %1617 = vrot.lane.b32.xlu0 %v2835_v62, %s2310_s26 }
0x22a3   :  { %v1618_v54 = vpop.permute.xlu0 %1617 }
0x22a4   :  { %v1620_v55 = vsel %vm513_vm6, %v1618_v54, %v2831_v11 }
0x22a5   :  { %v1621_v56 = vpack.c.bf16 %v1620_v55, %v1620_v55 }
0x22a7   :  { %2120 = vmatmul.mubr.msk.bf16.vlgmr.msra.gmra.mrb[32].mxu0 %vm315_vm7, %v1621_v56 }
0x237a   :  { %v1659_v13 = vpop.f32.mrb[32].mxu0 }
0x237b   :  { %v1660_v63 = vadd.f32 %v2738_v53, %v1659_v13  ;;  %v2121_v5 = vpop.f32.mrb[33].mxu0 }
0x237c   :  { %v1662_v2 = vpop.f32.mrb[34].mxu0 }
0x237d   :  { %v2122_v3 = vpop.f32.mrb[35].mxu0  ;;  %v1675_v57 = vrot.slane %v1660_v63, %v2415_v22  ;;  %v1668_v58 = vrot.slane %v1660_v63, %v2412_v18 }
0x237f   :  { %1677 = vbcast.lane.b32.xlu0 %v1675_v57, 256  ;;  %1670 = vbcast.lane.b32.xlu1 %v1668_v58, 256 }
0x2383   :  { %1728 = vrot.lane.b32.xlu1 %v2835_v62, %s2311_s27 }
0x23f1   :  { %v1678_v59 = vpop.permute.xlu0 %1677  ;;  %v1671_v4 = vpop.permute.xlu1 %1670 }
0x23f2   :  { %v1680_v6 = vadd.f32 %v1678_v59, %v2424_v36  ;;  %v1679_v61 = vadd.f32 %v1671_v4, %v2421_v33 }
0x23f4   :  { %2276 = vtanh.f32 %v1680_v6 }
0x23f5   :  { %2278 = vtanh.f32 %v1679_v61  ;;  %v1729_v1 = vpop.permute.xlu1 %1728 }
0x23fe   :  { %v2277_v53 = vpop.eup %2276 }
0x23ff   :  { %v2279_v7 = vpop.eup %2278  ;;  %v1684_v9 = vmul.f32 %v2277_v53, %v2419_v31 }
0x2400   :  { %v1683_v22 = vmul.f32 %v2279_v7, %v2419_v31 }
0x2401   :  { %v1692_v18 = vsel %vm379_vm2, %v1684_v9, 0.0 }
0x2402   :  { %v1693_v10 = vrot.slane %v1692_v18, 4  ;;  %v1685_v15 = vsel %vm379_vm2, %v1683_v22, 0.0 }
0x2403   :  { %v1686_v16 = vrot.slane %v1685_v15, 4 }
0x2404   :  { %v1694_v20 = vadd.f32 %v1693_v10, %v1692_v18 }
0x2405   :  { %v1687_v45 = vadd.f32 %v1686_v16, %v1685_v15 }
0x2406   :  { %v1695_v23 = vrot.slane %v1694_v20, 2 }
0x2407   :  { %v1688_v36 = vrot.slane %v1687_v45, 2 }
0x2408   :  { %v1696_v46 = vadd.f32 %v1695_v23, %v1694_v20 }
0x2409   :  { %v1689_v33 = vadd.f32 %v1688_v36, %v1687_v45 }
0x240a   :  { %v1697_v28 = vrot.slane %v1696_v46, 1 }
0x240b   :  { %v1690_v29 = vrot.slane %v1689_v33, 1 }
0x240c   :  { %v1698_v30 = vadd.f32 %v1697_v28, %v1696_v46 }
0x240d   :  { %v1691_v32 = vadd.f32 %v1690_v29, %v1689_v33 }
0x240e   :  { %v1701_v34 = vmul.f32 1.442695, %v1698_v30 }
0x240f   :  { %v1699_v17 = vmul.f32 1.442695, %v1691_v32 }
0x2410   :  { %2280 = vpow2.f32 %v1701_v34 }
0x2411   :  { %2282 = vpow2.f32 %v1699_v17 }
0x241a   :  { %v2281_v31 = vpop.eup %2280 }
0x241b   :  { %v2283_v35 = vpop.eup %2282 }
0x241c   :  { %v1705_v37 = vsel %vm400_vm3, %v2281_v31, %v2283_v35 }
0x241d   :  { %v1707_v38 = vsel %vm403_vm4, %v1705_v37, 0.0 }
0x241e   :  { %1708 = vadd.xlane.f32.xlu0 %v1707_v38 }
0x2434   :  { %1803 = vrot.lane.b32.xlu0 %v2588_v48, %s2312_s5 }
0x24ab   :  { %v1709_v39 = vpop.xlane.xlu0 %1708 }
0x24ac   :  { %2284 = vrcp.f32 %v1709_v39 }
0x24af   :  { %v1804_v53 = vpop.permute.xlu0 %1803 }
0x24b6   :  { %v2285_v41 = vpop.eup %2284 }
0x24b7   :  { %v1712_v42 = vrot.slane %v2285_v41, 1  ;;  %v1715_v21 = vmul.f32 %v2285_v41, %v2283_v35 }
0x24b9   :  { %v1716_v25 = vmul.f32 %v2281_v31, %v1712_v42  ;;  %v1721_v26 = vmul.f32 %v1717_v43, %v1715_v21 }
0x24bb   :  { %v1722_v47 = vmul.f32 %v1718_v24, %v1716_v25 }
0x24bd   :  { %v1725_v49 = vrot.slane %v1722_v47, 7 }
0x24bf   :  { %v1726_v27 = vsel %vm400_vm3, %v1725_v49, %v1721_v26 }
0x24c0   :  { %v1731_v50 = vsel %vm379_vm2, %v1726_v27, %v1729_v1 }
0x24c1   :  { %v1732_v52 = vpack.c.bf16 %v1731_v50, %v1731_v50 }
0x24c3   :  { %2130 = vmatmul.mubr.msk.bf16.vlgmr.msra.gmra.mrb[28].mxu1 %vm441_vm5, %v1732_v52 }
0x2596   :  { %v1770_v48 = vpop.f32.mrb[28].mxu1 }
0x2597   :  { %v1771_v12 = vadd.f32 %v2770_v0, %v1770_v48  ;;  %v2131_v60 = vpop.f32.mrb[29].mxu1 }
0x2598   :  { %v1773_v54 = vpop.f32.mrb[30].mxu1 }
0x2599   :  { %2286 = vtanh.f32 %v1771_v12  ;;  %v2132_v8 = vpop.f32.mrb[31].mxu1  ;;  %v1870_v56 = vmul.f32 -1.442695, %v1771_v12 }
0x259b   :  { %2288 = vpow2.f32 %v1870_v56 }
0x25a3   :  { %v2287_v55 = vpop.eup %2286 }
0x25a4   :  { %1785 = vrot.lane.b32.xlu1 %v2287_v55, %s2309_s25 }
0x25a5   :  { %v2289_v13 = vpop.eup %2288 }
0x25a6   :  { %v1779_v63 = vadd.f32 1.0, %v2289_v13 }
0x25a8   :  { %2290 = vrcp.f32 %v1779_v63 }
0x25b2   :  { %v2291_v5 = vpop.eup %2290 }
0x25b3   :  { %v1783_v0 = vmul.f32 %v2291_v5, %v2831_v11 }
0x2616   :  { %v1786_v2 = vpop.permute.xlu1 %1785 }
0x2617   :  { %v1788_v3 = vmul.f32 %v2291_v5, %v1786_v2 }
0x2619   :  { %1790 = vrot.lane.b32.xlu1 %v1788_v3, %s2310_s26 }
0x261d   :  { %1800 = vrot.lane.b32.xlu1 %v2537_v14, %s2309_s25 }
0x2621   :  { %1806 = vrot.lane.b32.xlu1 %v2780_v19, %s2309_s25 }
0x268b   :  { %v1791_v57 = vpop.permute.xlu1 %1790 }
0x268c   :  { %v1793_v58 = vadd.f32 %v1791_v57, %v1783_v0 }
0x268e   :  { %2292 = vtanh.f32 %v1793_v58 }
0x268f   :  { %v1801_v4 = vpop.permute.xlu1 %1800 }
0x2690   :  { %v1812_v61 = vsel %vm513_vm6, %v2488_v44, %v1801_v4 }
0x2691   :  { %v1813_v19 = vsel %vm315_vm7, %v1812_v61, %v1804_v53 }
0x2692   :  { %v1815_v18 = vsel %vm1814_vm8, %v1813_v19, %v2639_v40 }
0x2693   :  { %v1807_v6 = vpop.permute.xlu1 %1806 }
0x2694   :  { %v1816_v11 = vsel %vm513_vm6, %v2721_v51, %v1807_v6 }
0x2698   :  { %v2293_v59 = vpop.eup %2292 }
0x2699   :  { %1796 = vrot.lane.b32.xlu1 %v2293_v59, %s2309_s25 }
0x269d   :  { %1809 = vrot.lane.b32.xlu1 %v2835_v62, %s2312_s5 }
0x270b   :  { %v1797_v14 = vpop.permute.xlu1 %1796 }
0x270c   :  { %v1799_v7 = vmul.f32 %v2291_v5, %v1797_v14 }
0x270f   :  { %v1810_v9 = vpop.permute.xlu1 %1809 }
0x2710   :  { %v1817_v22 = vsel %vm315_vm7, %v1816_v11, %v1810_v9 }
0x2711   :  { %v1818_v62 = vsel %vm1814_vm8, %v1817_v22, %v1799_v7 }
0x2712   :  { %v1821_v10 = vcombine.low %v1815_v18, %v1818_v62 }
0x2714   :  { %1871 = vst.sshfl [vmem:[%s2890_s7] sm:$0x33 pattern:$0x76325410] %v1821_v10 }

</bundles_post_ra>
